<compile_context>
chip_gen: v7x
topology: tpu7x:2x2x1
jax: 0.10.0
libtpu: 0.0.40
codegen_flags: <defaults>
</compile_context>

<pallas_src>
import functools

import jax
import jax.numpy as jnp
from jax.experimental import pallas as pl
from jax.experimental.pallas import tpu as pltpu


# ---------------------------------------------------------------------------
# Kernel 1: batched embedding gather (scalar-prefetched ids + manual DMA)
# ---------------------------------------------------------------------------
def _embed_kernel(ids_ref, emb_hbm, out_ref, buf, sem, *, tok_block):
    # ids_ref : (T_pad,) int32 token ids in SMEM (scalar prefetch)
    # emb_hbm : (V, D) embedding table left in HBM (memory_space=pl.ANY)
    # out_ref : (tok_block, D) VMEM output block
    # buf     : (tok_block, D) VMEM gather buffer
    # sem     : (tok_block,) DMA semaphores
    base = pl.program_id(0) * tok_block
    # Issue all row DMAs, then wait for all of them (gather tok_block rows
    # per grid step instead of one row per grid step).
    for t in range(tok_block):
        pltpu.make_async_copy(
            emb_hbm.at[pl.ds(ids_ref[base + t], 1)],
            buf.at[pl.ds(t, 1)],
            sem.at[t],
        ).start()
    for t in range(tok_block):
        pltpu.make_async_copy(
            emb_hbm.at[pl.ds(ids_ref[base + t], 1)],
            buf.at[pl.ds(t, 1)],
            sem.at[t],
        ).wait()
    out_ref[...] = buf[...]


def embedding_lookup(tokens_flat, emb_table):
    """tokens_flat: (T,) int32 ; emb_table: (V, D) f32 -> (T, D) f32"""
    T = tokens_flat.shape[0]
    V, D = emb_table.shape
    tok_block = T if T <= 128 else 128
    T_pad = ((T + tok_block - 1) // tok_block) * tok_block

    ids = tokens_flat.astype(jnp.int32)
    if T_pad != T:
        ids = jnp.concatenate([ids, jnp.zeros((T_pad - T,), jnp.int32)])

    out = pl.pallas_call(
        functools.partial(_embed_kernel, tok_block=tok_block),
        out_shape=jax.ShapeDtypeStruct((T_pad, D), emb_table.dtype),
        grid_spec=pltpu.PrefetchScalarGridSpec(
            num_scalar_prefetch=1,
            grid=(T_pad // tok_block,),
            in_specs=[pl.BlockSpec(memory_space=pl.ANY)],  # table stays in HBM
            out_specs=pl.BlockSpec((tok_block, D), lambda i, ids: (i, 0)),
            scratch_shapes=[
                pltpu.VMEM((tok_block, D), emb_table.dtype),
                pltpu.SemaphoreType.DMA((tok_block,)),
            ],
        ),
        compiler_params=pltpu.CompilerParams(
            dimension_semantics=("parallel",)),
    )(ids, emb_table)
    return out[:T]


# ---------------------------------------------------------------------------
# Kernel 2: tiled linear layer  y = x @ w + b   (bf16 MXU inputs, f32 acc)
# ---------------------------------------------------------------------------
def _linear_kernel_single(x_ref, w_ref, b_ref, o_ref):
    # Whole reduction dim in one MXU pass; bias folded into the only epilogue.
    acc = jnp.dot(x_ref[...], w_ref[...], preferred_element_type=jnp.float32)
    o_ref[...] = (acc + b_ref[...]).astype(o_ref.dtype)


def _linear_kernel_multi(x_ref, w_ref, b_ref, o_ref, acc_ref):
    k = pl.program_id(2)

    @pl.when(k == 0)
    def _():
        # Initialize the accumulator with the bias (no extra epilogue add).
        acc_ref[...] = jnp.broadcast_to(
            b_ref[...].astype(jnp.float32), acc_ref.shape)

    acc_ref[...] += jnp.dot(x_ref[...], w_ref[...],
                            preferred_element_type=jnp.float32)

    @pl.when(k == pl.num_programs(2) - 1)
    def _():
        o_ref[...] = acc_ref[...].astype(o_ref.dtype)


def _pick_tile(dim, max_tile, step):
    """Largest tile <= max_tile that divides dim; full dim if it already fits."""
    if dim <= max_tile:
        return dim
    best = None
    for t in range(step, max_tile + 1, step):
        if dim % t == 0:
            best = t
    return best if best is not None else dim


def linear(x, w, b):
    """x: (M, K) bf16/f32 ; w: (K, N) bf16/f32 ; b: (1, N) f32 -> (M, N) f32"""
    M, K = x.shape
    K2, N = w.shape
    assert K == K2 and b.shape == (1, N)

    tm = _pick_tile(M, 256, 8)      # M//tm as small as possible -> weight read once
    tn = _pick_tile(N, 1024, 128)   # wide lane-dense output blocks
    tk = _pick_tile(K, 4096, 128)   # full reduction dim when it fits
    assert M % tm == 0 and N % tn == 0 and K % tk == 0

    # Double-buffered tile footprint -> explicit VMEM limit with headroom,
    # clamped so it is safe on v7x (64 MiB physical) as well as v5e/v6e.
    bytes_needed = 2 * (tm * tk * x.dtype.itemsize
                        + tk * tn * w.dtype.itemsize
                        + tn * b.dtype.itemsize
                        + tm * tn * 4) + tm * tn * 4
    vmem_limit = int(min(96 * 1024 * 1024,
                         max(32 * 1024 * 1024, 2 * bytes_needed)))

    nk = K // tk
    if nk == 1:
        grid = (M // tm, N // tn)
        kernel = _linear_kernel_single
        in_specs = [
            pl.BlockSpec((tm, tk), lambda i, j: (i, 0)),
            pl.BlockSpec((tk, tn), lambda i, j: (0, j)),
            pl.BlockSpec((1, tn), lambda i, j: (0, j)),
        ]
        out_specs = pl.BlockSpec((tm, tn), lambda i, j: (i, j))
        scratch = []
        semantics = ("parallel", "parallel")
    else:
        grid = (M // tm, N // tn, nk)
        kernel = _linear_kernel_multi
        in_specs = [
            pl.BlockSpec((tm, tk), lambda i, j, k: (i, k)),
            pl.BlockSpec((tk, tn), lambda i, j, k: (k, j)),
            pl.BlockSpec((1, tn), lambda i, j, k: (0, j)),
        ]
        out_specs = pl.BlockSpec((tm, tn), lambda i, j, k: (i, j))
        scratch = [pltpu.VMEM((tm, tn), jnp.float32)]
        semantics = ("parallel", "parallel", "arbitrary")

    return pl.pallas_call(
        kernel,
        out_shape=jax.ShapeDtypeStruct((M, N), jnp.float32),
        grid_spec=pltpu.PrefetchScalarGridSpec(
            num_scalar_prefetch=0,
            grid=grid,
            in_specs=in_specs,
            out_specs=out_specs,
            scratch_shapes=scratch,
        ),
        compiler_params=pltpu.CompilerParams(
            dimension_semantics=semantics,
            vmem_limit_bytes=vmem_limit),
    )(x, w, b)


# ---------------------------------------------------------------------------
# SimpleLlamaModel forward:  logits = Linear(Embedding(x))
# ---------------------------------------------------------------------------
def simple_llama_forward(tokens, emb_table, out_w_t, out_b):
    """tokens: (B, S) int32 -> logits (B, S, V) f32"""
    B, S = tokens.shape
    V, D = emb_table.shape
    tokens_flat = tokens.reshape(B * S).astype(jnp.int32)
    hidden = embedding_lookup(tokens_flat, emb_table)          # (B*S, D) f32
    # bf16 inputs for the MXU (f32 accumulation inside the kernel).
    logits = linear(hidden.astype(jnp.bfloat16),
                    out_w_t.astype(jnp.bfloat16),
                    out_b)                                     # (B*S, V) f32
    return logits.reshape(B, S, V)


if __name__ == "__main__":
    # Small, kernel-friendly config consistent with the module's __init__.
    params = {"vocab_size": 512, "dim": 128}
    V, D = params["vocab_size"], params["dim"]
    B, S = 2, 8

    key = jax.random.PRNGKey(0)
    k_emb, k_w, k_b, k_tok = jax.random.split(key, 4)

    # Deterministic synthetic parameters
    # (torch shapes: Embedding (V, D), Linear weight (V, D), bias (V,)).
    emb_table = jax.random.normal(k_emb, (V, D), dtype=jnp.float32) * 0.02
    out_w = jax.random.normal(k_w, (V, D), dtype=jnp.float32) * 0.02
    out_b = jax.random.normal(k_b, (V,), dtype=jnp.float32) * 0.01

    out_w_t = out_w.T                 # (D, V) for the kernel
    out_b_2d = out_b.reshape(1, V)    # (1, V)

    tokens = jax.random.randint(k_tok, (B, S), 0, V, dtype=jnp.int32)

    logits = simple_llama_forward(tokens, emb_table, out_w_t, out_b_2d)
    logits = jax.block_until_ready(logits)

    # Reference in plain JAX (matches torch: embedding(x) @ W.T + b), f32.
    ref = jnp.take(emb_table, tokens, axis=0) @ out_w.T + out_b
    assert logits.shape == (B, S, V)
    # bf16 MXU inputs + f32 accumulation -> slightly looser tolerance vs f32 ref.
    assert jnp.allclose(logits, ref, atol=2e-3, rtol=2e-2), float(
        jnp.max(jnp.abs(logits - ref)))

    print("KERNEL_OK")
</pallas_src>

<mosaic_0001>
module attributes {stable_mosaic.version = 11 : i64} {
  func.func @_embed_kernel(%arg0: i32, %arg1: memref<16xi32, #tpu.memory_space<smem>>, %arg2: memref<512x128xf32, #tpu.memory_space<any>>, %arg3: memref<16x128xf32, #tpu.memory_space<vmem>>, %arg4: memref<16x128xf32, #tpu.memory_space<vmem>>, %arg5: memref<16x!tpu.dma_semaphore, #tpu.memory_space<semaphore_mem>>) attributes {dimension_semantics = [#tpu.dimension_semantics<parallel>], iteration_bounds = array<i64: 1>, scalar_prefetch = 1 : i64, scratch_operands = 2 : i64, tpu.core_type = #tpu.core_type<tc>, window_params = [{}, {transform_indices = @transform_1, window_bounds = array<i64: 16, 128>}]} {
    %c16_i32 = arith.constant 16 : i32
    %0 = arith.muli %arg0, %c16_i32 : i32
    %c0_i32 = arith.constant 0 : i32
    %1 = arith.addi %0, %c0_i32 : i32
    %2 = arith.index_cast %1 : i32 to index
    %3 = memref.load %arg1[%2] : memref<16xi32, #tpu.memory_space<smem>>
    %c0_i32_0 = arith.constant 0 : i32
    %c0_i32_1 = arith.constant 0 : i32
    %4 = tpu.memref_slice %arg2[%3, %c0_i32_1] : memref<512x128xf32, #tpu.memory_space<any>> -> memref<1x128xf32, #tpu.memory_space<any>>
    %c0_i32_2 = arith.constant 0 : i32
    %c0_i32_3 = arith.constant 0 : i32
    %5 = tpu.memref_slice %arg4[%c0_i32_2, %c0_i32_3] : memref<16x128xf32, #tpu.memory_space<vmem>> -> memref<1x128xf32, #tpu.memory_space<vmem>>
    %6 = tpu.memref_slice %arg5[%c0_i32_0] : memref<16x!tpu.dma_semaphore, #tpu.memory_space<semaphore_mem>> -> memref<1x!tpu.dma_semaphore, #tpu.memory_space<semaphore_mem>>
    %7 = tpu.memref_squeeze %6 : memref<1x!tpu.dma_semaphore, #tpu.memory_space<semaphore_mem>> -> memref<!tpu.dma_semaphore, #tpu.memory_space<semaphore_mem>>
    tpu.enqueue_dma source(%4 : memref<1x128xf32, #tpu.memory_space<any>>) target(%5 : memref<1x128xf32, #tpu.memory_space<vmem>>) target_semaphore(%7 : memref<!tpu.dma_semaphore, #tpu.memory_space<semaphore_mem>>)
    %c1_i32 = arith.constant 1 : i32
    %8 = arith.addi %0, %c1_i32 : i32
    %9 = arith.index_cast %8 : i32 to index
    %10 = memref.load %arg1[%9] : memref<16xi32, #tpu.memory_space<smem>>
    %c1_i32_4 = arith.constant 1 : i32
    %c0_i32_5 = arith.constant 0 : i32
    %11 = tpu.memref_slice %arg2[%10, %c0_i32_5] : memref<512x128xf32, #tpu.memory_space<any>> -> memref<1x128xf32, #tpu.memory_space<any>>
    %c1_i32_6 = arith.constant 1 : i32
    %c0_i32_7 = arith.constant 0 : i32
    %12 = tpu.memref_slice %arg4[%c1_i32_6, %c0_i32_7] : memref<16x128xf32, #tpu.memory_space<vmem>> -> memref<1x128xf32, #tpu.memory_space<vmem>>
    %13 = tpu.memref_slice %arg5[%c1_i32_4] : memref<16x!tpu.dma_semaphore, #tpu.memory_space<semaphore_mem>> -> memref<1x!tpu.dma_semaphore, #tpu.memory_space<semaphore_mem>>
    %14 = tpu.memref_squeeze %13 : memref<1x!tpu.dma_semaphore, #tpu.memory_space<semaphore_mem>> -> memref<!tpu.dma_semaphore, #tpu.memory_space<semaphore_mem>>
    tpu.enqueue_dma source(%11 : memref<1x128xf32, #tpu.memory_space<any>>) target(%12 : memref<1x128xf32, #tpu.memory_space<vmem>>) target_semaphore(%14 : memref<!tpu.dma_semaphore, #tpu.memory_space<semaphore_mem>>)
    %c2_i32 = arith.constant 2 : i32
    %15 = arith.addi %0, %c2_i32 : i32
    %16 = arith.index_cast %15 : i32 to index
    %17 = memref.load %arg1[%16] : memref<16xi32, #tpu.memory_space<smem>>
    %c2_i32_8 = arith.constant 2 : i32
    %c0_i32_9 = arith.constant 0 : i32
    %18 = tpu.memref_slice %arg2[%17, %c0_i32_9] : memref<512x128xf32, #tpu.memory_space<any>> -> memref<1x128xf32, #tpu.memory_space<any>>
    %c2_i32_10 = arith.constant 2 : i32
    %c0_i32_11 = arith.constant 0 : i32
    %19 = tpu.memref_slice %arg4[%c2_i32_10, %c0_i32_11] : memref<16x128xf32, #tpu.memory_space<vmem>> -> memref<1x128xf32, #tpu.memory_space<vmem>>
    %20 = tpu.memref_slice %arg5[%c2_i32_8] : memref<16x!tpu.dma_semaphore, #tpu.memory_space<semaphore_mem>> -> memref<1x!tpu.dma_semaphore, #tpu.memory_space<semaphore_mem>>
    %21 = tpu.memref_squeeze %20 : memref<1x!tpu.dma_semaphore, #tpu.memory_space<semaphore_mem>> -> memref<!tpu.dma_semaphore, #tpu.memory_space<semaphore_mem>>
    tpu.enqueue_dma source(%18 : memref<1x128xf32, #tpu.memory_space<any>>) target(%19 : memref<1x128xf32, #tpu.memory_space<vmem>>) target_semaphore(%21 : memref<!tpu.dma_semaphore, #tpu.memory_space<semaphore_mem>>)
    %c3_i32 = arith.constant 3 : i32
    %22 = arith.addi %0, %c3_i32 : i32
    %23 = arith.index_cast %22 : i32 to index
    %24 = memref.load %arg1[%23] : memref<16xi32, #tpu.memory_space<smem>>
    %c3_i32_12 = arith.constant 3 : i32
    %c0_i32_13 = arith.constant 0 : i32
    %25 = tpu.memref_slice %arg2[%24, %c0_i32_13] : memref<512x128xf32, #tpu.memory_space<any>> -> memref<1x128xf32, #tpu.memory_space<any>>
    %c3_i32_14 = arith.constant 3 : i32
    %c0_i32_15 = arith.constant 0 : i32
    %26 = tpu.memref_slice %arg4[%c3_i32_14, %c0_i32_15] : memref<16x128xf32, #tpu.memory_space<vmem>> -> memref<1x128xf32, #tpu.memory_space<vmem>>
    %27 = tpu.memref_slice %arg5[%c3_i32_12] : memref<16x!tpu.dma_semaphore, #tpu.memory_space<semaphore_mem>> -> memref<1x!tpu.dma_semaphore, #tpu.memory_space<semaphore_mem>>
    %28 = tpu.memref_squeeze %27 : memref<1x!tpu.dma_semaphore, #tpu.memory_space<semaphore_mem>> -> memref<!tpu.dma_semaphore, #tpu.memory_space<semaphore_mem>>
    tpu.enqueue_dma source(%25 : memref<1x128xf32, #tpu.memory_space<any>>) target(%26 : memref<1x128xf32, #tpu.memory_space<vmem>>) target_semaphore(%28 : memref<!tpu.dma_semaphore, #tpu.memory_space<semaphore_mem>>)
    %c4_i32 = arith.constant 4 : i32
    %29 = arith.addi %0, %c4_i32 : i32
    %30 = arith.index_cast %29 : i32 to index
    %31 = memref.load %arg1[%30] : memref<16xi32, #tpu.memory_space<smem>>
    %c4_i32_16 = arith.constant 4 : i32
    %c0_i32_17 = arith.constant 0 : i32
    %32 = tpu.memref_slice %arg2[%31, %c0_i32_17] : memref<512x128xf32, #tpu.memory_space<any>> -> memref<1x128xf32, #tpu.memory_space<any>>
    %c4_i32_18 = arith.constant 4 : i32
    %c0_i32_19 = arith.constant 0 : i32
    %33 = tpu.memref_slice %arg4[%c4_i32_18, %c0_i32_19] : memref<16x128xf32, #tpu.memory_space<vmem>> -> memref<1x128xf32, #tpu.memory_space<vmem>>
    %34 = tpu.memref_slice %arg5[%c4_i32_16] : memref<16x!tpu.dma_semaphore, #tpu.memory_space<semaphore_mem>> -> memref<1x!tpu.dma_semaphore, #tpu.memory_space<semaphore_mem>>
    %35 = tpu.memref_squeeze %34 : memref<1x!tpu.dma_semaphore, #tpu.memory_space<semaphore_mem>> -> memref<!tpu.dma_semaphore, #tpu.memory_space<semaphore_mem>>
    tpu.enqueue_dma source(%32 : memref<1x128xf32, #tpu.memory_space<any>>) target(%33 : memref<1x128xf32, #tpu.memory_space<vmem>>) target_semaphore(%35 : memref<!tpu.dma_semaphore, #tpu.memory_space<semaphore_mem>>)
    %c5_i32 = arith.constant 5 : i32
    %36 = arith.addi %0, %c5_i32 : i32
    %37 = arith.index_cast %36 : i32 to index
    %38 = memref.load %arg1[%37] : memref<16xi32, #tpu.memory_space<smem>>
    %c5_i32_20 = arith.constant 5 : i32
    %c0_i32_21 = arith.constant 0 : i32
    %39 = tpu.memref_slice %arg2[%38, %c0_i32_21] : memref<512x128xf32, #tpu.memory_space<any>> -> memref<1x128xf32, #tpu.memory_space<any>>
    %c5_i32_22 = arith.constant 5 : i32
    %c0_i32_23 = arith.constant 0 : i32
    %40 = tpu.memref_slice %arg4[%c5_i32_22, %c0_i32_23] : memref<16x128xf32, #tpu.memory_space<vmem>> -> memref<1x128xf32, #tpu.memory_space<vmem>>
    %41 = tpu.memref_slice %arg5[%c5_i32_20] : memref<16x!tpu.dma_semaphore, #tpu.memory_space<semaphore_mem>> -> memref<1x!tpu.dma_semaphore, #tpu.memory_space<semaphore_mem>>
    %42 = tpu.memref_squeeze %41 : memref<1x!tpu.dma_semaphore, #tpu.memory_space<semaphore_mem>> -> memref<!tpu.dma_semaphore, #tpu.memory_space<semaphore_mem>>
    tpu.enqueue_dma source(%39 : memref<1x128xf32, #tpu.memory_space<any>>) target(%40 : memref<1x128xf32, #tpu.memory_space<vmem>>) target_semaphore(%42 : memref<!tpu.dma_semaphore, #tpu.memory_space<semaphore_mem>>)
    %c6_i32 = arith.constant 6 : i32
    %43 = arith.addi %0, %c6_i32 : i32
    %44 = arith.index_cast %43 : i32 to index
    %45 = memref.load %arg1[%44] : memref<16xi32, #tpu.memory_space<smem>>
    %c6_i32_24 = arith.constant 6 : i32
    %c0_i32_25 = arith.constant 0 : i32
    %46 = tpu.memref_slice %arg2[%45, %c0_i32_25] : memref<512x128xf32, #tpu.memory_space<any>> -> memref<1x128xf32, #tpu.memory_space<any>>
    %c6_i32_26 = arith.constant 6 : i32
    %c0_i32_27 = arith.constant 0 : i32
    %47 = tpu.memref_slice %arg4[%c6_i32_26, %c0_i32_27] : memref<16x128xf32, #tpu.memory_space<vmem>> -> memref<1x128xf32, #tpu.memory_space<vmem>>
    %48 = tpu.memref_slice %arg5[%c6_i32_24] : memref<16x!tpu.dma_semaphore, #tpu.memory_space<semaphore_mem>> -> memref<1x!tpu.dma_semaphore, #tpu.memory_space<semaphore_mem>>
    %49 = tpu.memref_squeeze %48 : memref<1x!tpu.dma_semaphore, #tpu.memory_space<semaphore_mem>> -> memref<!tpu.dma_semaphore, #tpu.memory_space<semaphore_mem>>
    tpu.enqueue_dma source(%46 : memref<1x128xf32, #tpu.memory_space<any>>) target(%47 : memref<1x128xf32, #tpu.memory_space<vmem>>) target_semaphore(%49 : memref<!tpu.dma_semaphore, #tpu.memory_space<semaphore_mem>>)
    %c7_i32 = arith.constant 7 : i32
    %50 = arith.addi %0, %c7_i32 : i32
    %51 = arith.index_cast %50 : i32 to index
    %52 = memref.load %arg1[%51] : memref<16xi32, #tpu.memory_space<smem>>
    %c7_i32_28 = arith.constant 7 : i32
    %c0_i32_29 = arith.constant 0 : i32
    %53 = tpu.memref_slice %arg2[%52, %c0_i32_29] : memref<512x128xf32, #tpu.memory_space<any>> -> memref<1x128xf32, #tpu.memory_space<any>>
    %c7_i32_30 = arith.constant 7 : i32
    %c0_i32_31 = arith.constant 0 : i32
    %54 = tpu.memref_slice %arg4[%c7_i32_30, %c0_i32_31] : memref<16x128xf32, #tpu.memory_space<vmem>> -> memref<1x128xf32, #tpu.memory_space<vmem>>
    %55 = tpu.memref_slice %arg5[%c7_i32_28] : memref<16x!tpu.dma_semaphore, #tpu.memory_space<semaphore_mem>> -> memref<1x!tpu.dma_semaphore, #tpu.memory_space<semaphore_mem>>
    %56 = tpu.memref_squeeze %55 : memref<1x!tpu.dma_semaphore, #tpu.memory_space<semaphore_mem>> -> memref<!tpu.dma_semaphore, #tpu.memory_space<semaphore_mem>>
    tpu.enqueue_dma source(%53 : memref<1x128xf32, #tpu.memory_space<any>>) target(%54 : memref<1x128xf32, #tpu.memory_space<vmem>>) target_semaphore(%56 : memref<!tpu.dma_semaphore, #tpu.memory_space<semaphore_mem>>)
    %c8_i32 = arith.constant 8 : i32
    %57 = arith.addi %0, %c8_i32 : i32
    %58 = arith.index_cast %57 : i32 to index
    %59 = memref.load %arg1[%58] : memref<16xi32, #tpu.memory_space<smem>>
    %c8_i32_32 = arith.constant 8 : i32
    %c0_i32_33 = arith.constant 0 : i32
    %60 = tpu.memref_slice %arg2[%59, %c0_i32_33] : memref<512x128xf32, #tpu.memory_space<any>> -> memref<1x128xf32, #tpu.memory_space<any>>
    %c8_i32_34 = arith.constant 8 : i32
    %c0_i32_35 = arith.constant 0 : i32
    %61 = tpu.memref_slice %arg4[%c8_i32_34, %c0_i32_35] : memref<16x128xf32, #tpu.memory_space<vmem>> -> memref<1x128xf32, #tpu.memory_space<vmem>>
    %62 = tpu.memref_slice %arg5[%c8_i32_32] : memref<16x!tpu.dma_semaphore, #tpu.memory_space<semaphore_mem>> -> memref<1x!tpu.dma_semaphore, #tpu.memory_space<semaphore_mem>>
    %63 = tpu.memref_squeeze %62 : memref<1x!tpu.dma_semaphore, #tpu.memory_space<semaphore_mem>> -> memref<!tpu.dma_semaphore, #tpu.memory_space<semaphore_mem>>
    tpu.enqueue_dma source(%60 : memref<1x128xf32, #tpu.memory_space<any>>) target(%61 : memref<1x128xf32, #tpu.memory_space<vmem>>) target_semaphore(%63 : memref<!tpu.dma_semaphore, #tpu.memory_space<semaphore_mem>>)
    %c9_i32 = arith.constant 9 : i32
    %64 = arith.addi %0, %c9_i32 : i32
    %65 = arith.index_cast %64 : i32 to index
    %66 = memref.load %arg1[%65] : memref<16xi32, #tpu.memory_space<smem>>
    %c9_i32_36 = arith.constant 9 : i32
    %c0_i32_37 = arith.constant 0 : i32
    %67 = tpu.memref_slice %arg2[%66, %c0_i32_37] : memref<512x128xf32, #tpu.memory_space<any>> -> memref<1x128xf32, #tpu.memory_space<any>>
    %c9_i32_38 = arith.constant 9 : i32
    %c0_i32_39 = arith.constant 0 : i32
    %68 = tpu.memref_slice %arg4[%c9_i32_38, %c0_i32_39] : memref<16x128xf32, #tpu.memory_space<vmem>> -> memref<1x128xf32, #tpu.memory_space<vmem>>
    %69 = tpu.memref_slice %arg5[%c9_i32_36] : memref<16x!tpu.dma_semaphore, #tpu.memory_space<semaphore_mem>> -> memref<1x!tpu.dma_semaphore, #tpu.memory_space<semaphore_mem>>
    %70 = tpu.memref_squeeze %69 : memref<1x!tpu.dma_semaphore, #tpu.memory_space<semaphore_mem>> -> memref<!tpu.dma_semaphore, #tpu.memory_space<semaphore_mem>>
    tpu.enqueue_dma source(%67 : memref<1x128xf32, #tpu.memory_space<any>>) target(%68 : memref<1x128xf32, #tpu.memory_space<vmem>>) target_semaphore(%70 : memref<!tpu.dma_semaphore, #tpu.memory_space<semaphore_mem>>)
    %c10_i32 = arith.constant 10 : i32
    %71 = arith.addi %0, %c10_i32 : i32
    %72 = arith.index_cast %71 : i32 to index
    %73 = memref.load %arg1[%72] : memref<16xi32, #tpu.memory_space<smem>>
    %c10_i32_40 = arith.constant 10 : i32
    %c0_i32_41 = arith.constant 0 : i32
    %74 = tpu.memref_slice %arg2[%73, %c0_i32_41] : memref<512x128xf32, #tpu.memory_space<any>> -> memref<1x128xf32, #tpu.memory_space<any>>
    %c10_i32_42 = arith.constant 10 : i32
    %c0_i32_43 = arith.constant 0 : i32
    %75 = tpu.memref_slice %arg4[%c10_i32_42, %c0_i32_43] : memref<16x128xf32, #tpu.memory_space<vmem>> -> memref<1x128xf32, #tpu.memory_space<vmem>>
    %76 = tpu.memref_slice %arg5[%c10_i32_40] : memref<16x!tpu.dma_semaphore, #tpu.memory_space<semaphore_mem>> -> memref<1x!tpu.dma_semaphore, #tpu.memory_space<semaphore_mem>>
    %77 = tpu.memref_squeeze %76 : memref<1x!tpu.dma_semaphore, #tpu.memory_space<semaphore_mem>> -> memref<!tpu.dma_semaphore, #tpu.memory_space<semaphore_mem>>
    tpu.enqueue_dma source(%74 : memref<1x128xf32, #tpu.memory_space<any>>) target(%75 : memref<1x128xf32, #tpu.memory_space<vmem>>) target_semaphore(%77 : memref<!tpu.dma_semaphore, #tpu.memory_space<semaphore_mem>>)
    %c11_i32 = arith.constant 11 : i32
    %78 = arith.addi %0, %c11_i32 : i32
    %79 = arith.index_cast %78 : i32 to index
    %80 = memref.load %arg1[%79] : memref<16xi32, #tpu.memory_space<smem>>
    %c11_i32_44 = arith.constant 11 : i32
    %c0_i32_45 = arith.constant 0 : i32
    %81 = tpu.memref_slice %arg2[%80, %c0_i32_45] : memref<512x128xf32, #tpu.memory_space<any>> -> memref<1x128xf32, #tpu.memory_space<any>>
    %c11_i32_46 = arith.constant 11 : i32
    %c0_i32_47 = arith.constant 0 : i32
    %82 = tpu.memref_slice %arg4[%c11_i32_46, %c0_i32_47] : memref<16x128xf32, #tpu.memory_space<vmem>> -> memref<1x128xf32, #tpu.memory_space<vmem>>
    %83 = tpu.memref_slice %arg5[%c11_i32_44] : memref<16x!tpu.dma_semaphore, #tpu.memory_space<semaphore_mem>> -> memref<1x!tpu.dma_semaphore, #tpu.memory_space<semaphore_mem>>
    %84 = tpu.memref_squeeze %83 : memref<1x!tpu.dma_semaphore, #tpu.memory_space<semaphore_mem>> -> memref<!tpu.dma_semaphore, #tpu.memory_space<semaphore_mem>>
    tpu.enqueue_dma source(%81 : memref<1x128xf32, #tpu.memory_space<any>>) target(%82 : memref<1x128xf32, #tpu.memory_space<vmem>>) target_semaphore(%84 : memref<!tpu.dma_semaphore, #tpu.memory_space<semaphore_mem>>)
    %c12_i32 = arith.constant 12 : i32
    %85 = arith.addi %0, %c12_i32 : i32
    %86 = arith.index_cast %85 : i32 to index
    %87 = memref.load %arg1[%86] : memref<16xi32, #tpu.memory_space<smem>>
    %c12_i32_48 = arith.constant 12 : i32
    %c0_i32_49 = arith.constant 0 : i32
    %88 = tpu.memref_slice %arg2[%87, %c0_i32_49] : memref<512x128xf32, #tpu.memory_space<any>> -> memref<1x128xf32, #tpu.memory_space<any>>
    %c12_i32_50 = arith.constant 12 : i32
    %c0_i32_51 = arith.constant 0 : i32
    %89 = tpu.memref_slice %arg4[%c12_i32_50, %c0_i32_51] : memref<16x128xf32, #tpu.memory_space<vmem>> -> memref<1x128xf32, #tpu.memory_space<vmem>>
    %90 = tpu.memref_slice %arg5[%c12_i32_48] : memref<16x!tpu.dma_semaphore, #tpu.memory_space<semaphore_mem>> -> memref<1x!tpu.dma_semaphore, #tpu.memory_space<semaphore_mem>>
    %91 = tpu.memref_squeeze %90 : memref<1x!tpu.dma_semaphore, #tpu.memory_space<semaphore_mem>> -> memref<!tpu.dma_semaphore, #tpu.memory_space<semaphore_mem>>
    tpu.enqueue_dma source(%88 : memref<1x128xf32, #tpu.memory_space<any>>) target(%89 : memref<1x128xf32, #tpu.memory_space<vmem>>) target_semaphore(%91 : memref<!tpu.dma_semaphore, #tpu.memory_space<semaphore_mem>>)
    %c13_i32 = arith.constant 13 : i32
    %92 = arith.addi %0, %c13_i32 : i32
    %93 = arith.index_cast %92 : i32 to index
    %94 = memref.load %arg1[%93] : memref<16xi32, #tpu.memory_space<smem>>
    %c13_i32_52 = arith.constant 13 : i32
    %c0_i32_53 = arith.constant 0 : i32
    %95 = tpu.memref_slice %arg2[%94, %c0_i32_53] : memref<512x128xf32, #tpu.memory_space<any>> -> memref<1x128xf32, #tpu.memory_space<any>>
    %c13_i32_54 = arith.constant 13 : i32
    %c0_i32_55 = arith.constant 0 : i32
    %96 = tpu.memref_slice %arg4[%c13_i32_54, %c0_i32_55] : memref<16x128xf32, #tpu.memory_space<vmem>> -> memref<1x128xf32, #tpu.memory_space<vmem>>
    %97 = tpu.memref_slice %arg5[%c13_i32_52] : memref<16x!tpu.dma_semaphore, #tpu.memory_space<semaphore_mem>> -> memref<1x!tpu.dma_semaphore, #tpu.memory_space<semaphore_mem>>
    %98 = tpu.memref_squeeze %97 : memref<1x!tpu.dma_semaphore, #tpu.memory_space<semaphore_mem>> -> memref<!tpu.dma_semaphore, #tpu.memory_space<semaphore_mem>>
    tpu.enqueue_dma source(%95 : memref<1x128xf32, #tpu.memory_space<any>>) target(%96 : memref<1x128xf32, #tpu.memory_space<vmem>>) target_semaphore(%98 : memref<!tpu.dma_semaphore, #tpu.memory_space<semaphore_mem>>)
    %c14_i32 = arith.constant 14 : i32
    %99 = arith.addi %0, %c14_i32 : i32
    %100 = arith.index_cast %99 : i32 to index
    %101 = memref.load %arg1[%100] : memref<16xi32, #tpu.memory_space<smem>>
    %c14_i32_56 = arith.constant 14 : i32
    %c0_i32_57 = arith.constant 0 : i32
    %102 = tpu.memref_slice %arg2[%101, %c0_i32_57] : memref<512x128xf32, #tpu.memory_space<any>> -> memref<1x128xf32, #tpu.memory_space<any>>
    %c14_i32_58 = arith.constant 14 : i32
    %c0_i32_59 = arith.constant 0 : i32
    %103 = tpu.memref_slice %arg4[%c14_i32_58, %c0_i32_59] : memref<16x128xf32, #tpu.memory_space<vmem>> -> memref<1x128xf32, #tpu.memory_space<vmem>>
    %104 = tpu.memref_slice %arg5[%c14_i32_56] : memref<16x!tpu.dma_semaphore, #tpu.memory_space<semaphore_mem>> -> memref<1x!tpu.dma_semaphore, #tpu.memory_space<semaphore_mem>>
    %105 = tpu.memref_squeeze %104 : memref<1x!tpu.dma_semaphore, #tpu.memory_space<semaphore_mem>> -> memref<!tpu.dma_semaphore, #tpu.memory_space<semaphore_mem>>
    tpu.enqueue_dma source(%102 : memref<1x128xf32, #tpu.memory_space<any>>) target(%103 : memref<1x128xf32, #tpu.memory_space<vmem>>) target_semaphore(%105 : memref<!tpu.dma_semaphore, #tpu.memory_space<semaphore_mem>>)
    %c15_i32 = arith.constant 15 : i32
    %106 = arith.addi %0, %c15_i32 : i32
    %107 = arith.index_cast %106 : i32 to index
    %108 = memref.load %arg1[%107] : memref<16xi32, #tpu.memory_space<smem>>
    %c15_i32_60 = arith.constant 15 : i32
    %c0_i32_61 = arith.constant 0 : i32
    %109 = tpu.memref_slice %arg2[%108, %c0_i32_61] : memref<512x128xf32, #tpu.memory_space<any>> -> memref<1x128xf32, #tpu.memory_space<any>>
    %c15_i32_62 = arith.constant 15 : i32
    %c0_i32_63 = arith.constant 0 : i32
    %110 = tpu.memref_slice %arg4[%c15_i32_62, %c0_i32_63] : memref<16x128xf32, #tpu.memory_space<vmem>> -> memref<1x128xf32, #tpu.memory_space<vmem>>
    %111 = tpu.memref_slice %arg5[%c15_i32_60] : memref<16x!tpu.dma_semaphore, #tpu.memory_space<semaphore_mem>> -> memref<1x!tpu.dma_semaphore, #tpu.memory_space<semaphore_mem>>
    %112 = tpu.memref_squeeze %111 : memref<1x!tpu.dma_semaphore, #tpu.memory_space<semaphore_mem>> -> memref<!tpu.dma_semaphore, #tpu.memory_space<semaphore_mem>>
    tpu.enqueue_dma source(%109 : memref<1x128xf32, #tpu.memory_space<any>>) target(%110 : memref<1x128xf32, #tpu.memory_space<vmem>>) target_semaphore(%112 : memref<!tpu.dma_semaphore, #tpu.memory_space<semaphore_mem>>)
    %c0_i32_64 = arith.constant 0 : i32
    %113 = arith.addi %0, %c0_i32_64 : i32
    %114 = arith.index_cast %113 : i32 to index
    %115 = memref.load %arg1[%114] : memref<16xi32, #tpu.memory_space<smem>>
    %c0_i32_65 = arith.constant 0 : i32
    %c0_i32_66 = arith.constant 0 : i32
    %116 = tpu.memref_slice %arg2[%115, %c0_i32_66] : memref<512x128xf32, #tpu.memory_space<any>> -> memref<1x128xf32, #tpu.memory_space<any>>
    %c0_i32_67 = arith.constant 0 : i32
    %c0_i32_68 = arith.constant 0 : i32
    %117 = tpu.memref_slice %arg4[%c0_i32_67, %c0_i32_68] : memref<16x128xf32, #tpu.memory_space<vmem>> -> memref<1x128xf32, #tpu.memory_space<vmem>>
    %118 = tpu.memref_slice %arg5[%c0_i32_65] : memref<16x!tpu.dma_semaphore, #tpu.memory_space<semaphore_mem>> -> memref<1x!tpu.dma_semaphore, #tpu.memory_space<semaphore_mem>>
    %119 = tpu.memref_squeeze %118 : memref<1x!tpu.dma_semaphore, #tpu.memory_space<semaphore_mem>> -> memref<!tpu.dma_semaphore, #tpu.memory_space<semaphore_mem>>
    tpu.wait_dma2 semaphore(%119 : memref<!tpu.dma_semaphore, #tpu.memory_space<semaphore_mem>>) src(%116 : memref<1x128xf32, #tpu.memory_space<any>>) dst(%117 : memref<1x128xf32, #tpu.memory_space<vmem>>)
    %c1_i32_69 = arith.constant 1 : i32
    %120 = arith.addi %0, %c1_i32_69 : i32
    %121 = arith.index_cast %120 : i32 to index
    %122 = memref.load %arg1[%121] : memref<16xi32, #tpu.memory_space<smem>>
    %c1_i32_70 = arith.constant 1 : i32
    %c0_i32_71 = arith.constant 0 : i32
    %123 = tpu.memref_slice %arg2[%122, %c0_i32_71] : memref<512x128xf32, #tpu.memory_space<any>> -> memref<1x128xf32, #tpu.memory_space<any>>
    %c1_i32_72 = arith.constant 1 : i32
    %c0_i32_73 = arith.constant 0 : i32
    %124 = tpu.memref_slice %arg4[%c1_i32_72, %c0_i32_73] : memref<16x128xf32, #tpu.memory_space<vmem>> -> memref<1x128xf32, #tpu.memory_space<vmem>>
    %125 = tpu.memref_slice %arg5[%c1_i32_70] : memref<16x!tpu.dma_semaphore, #tpu.memory_space<semaphore_mem>> -> memref<1x!tpu.dma_semaphore, #tpu.memory_space<semaphore_mem>>
    %126 = tpu.memref_squeeze %125 : memref<1x!tpu.dma_semaphore, #tpu.memory_space<semaphore_mem>> -> memref<!tpu.dma_semaphore, #tpu.memory_space<semaphore_mem>>
    tpu.wait_dma2 semaphore(%126 : memref<!tpu.dma_semaphore, #tpu.memory_space<semaphore_mem>>) src(%123 : memref<1x128xf32, #tpu.memory_space<any>>) dst(%124 : memref<1x128xf32, #tpu.memory_space<vmem>>)
    %c2_i32_74 = arith.constant 2 : i32
    %127 = arith.addi %0, %c2_i32_74 : i32
    %128 = arith.index_cast %127 : i32 to index
    %129 = memref.load %arg1[%128] : memref<16xi32, #tpu.memory_space<smem>>
    %c2_i32_75 = arith.constant 2 : i32
    %c0_i32_76 = arith.constant 0 : i32
    %130 = tpu.memref_slice %arg2[%129, %c0_i32_76] : memref<512x128xf32, #tpu.memory_space<any>> -> memref<1x128xf32, #tpu.memory_space<any>>
    %c2_i32_77 = arith.constant 2 : i32
    %c0_i32_78 = arith.constant 0 : i32
    %131 = tpu.memref_slice %arg4[%c2_i32_77, %c0_i32_78] : memref<16x128xf32, #tpu.memory_space<vmem>> -> memref<1x128xf32, #tpu.memory_space<vmem>>
    %132 = tpu.memref_slice %arg5[%c2_i32_75] : memref<16x!tpu.dma_semaphore, #tpu.memory_space<semaphore_mem>> -> memref<1x!tpu.dma_semaphore, #tpu.memory_space<semaphore_mem>>
    %133 = tpu.memref_squeeze %132 : memref<1x!tpu.dma_semaphore, #tpu.memory_space<semaphore_mem>> -> memref<!tpu.dma_semaphore, #tpu.memory_space<semaphore_mem>>
    tpu.wait_dma2 semaphore(%133 : memref<!tpu.dma_semaphore, #tpu.memory_space<semaphore_mem>>) src(%130 : memref<1x128xf32, #tpu.memory_space<any>>) dst(%131 : memref<1x128xf32, #tpu.memory_space<vmem>>)
    %c3_i32_79 = arith.constant 3 : i32
    %134 = arith.addi %0, %c3_i32_79 : i32
    %135 = arith.index_cast %134 : i32 to index
    %136 = memref.load %arg1[%135] : memref<16xi32, #tpu.memory_space<smem>>
    %c3_i32_80 = arith.constant 3 : i32
    %c0_i32_81 = arith.constant 0 : i32
    %137 = tpu.memref_slice %arg2[%136, %c0_i32_81] : memref<512x128xf32, #tpu.memory_space<any>> -> memref<1x128xf32, #tpu.memory_space<any>>
    %c3_i32_82 = arith.constant 3 : i32
    %c0_i32_83 = arith.constant 0 : i32
    %138 = tpu.memref_slice %arg4[%c3_i32_82, %c0_i32_83] : memref<16x128xf32, #tpu.memory_space<vmem>> -> memref<1x128xf32, #tpu.memory_space<vmem>>
    %139 = tpu.memref_slice %arg5[%c3_i32_80] : memref<16x!tpu.dma_semaphore, #tpu.memory_space<semaphore_mem>> -> memref<1x!tpu.dma_semaphore, #tpu.memory_space<semaphore_mem>>
    %140 = tpu.memref_squeeze %139 : memref<1x!tpu.dma_semaphore, #tpu.memory_space<semaphore_mem>> -> memref<!tpu.dma_semaphore, #tpu.memory_space<semaphore_mem>>
    tpu.wait_dma2 semaphore(%140 : memref<!tpu.dma_semaphore, #tpu.memory_space<semaphore_mem>>) src(%137 : memref<1x128xf32, #tpu.memory_space<any>>) dst(%138 : memref<1x128xf32, #tpu.memory_space<vmem>>)
    %c4_i32_84 = arith.constant 4 : i32
    %141 = arith.addi %0, %c4_i32_84 : i32
    %142 = arith.index_cast %141 : i32 to index
    %143 = memref.load %arg1[%142] : memref<16xi32, #tpu.memory_space<smem>>
    %c4_i32_85 = arith.constant 4 : i32
    %c0_i32_86 = arith.constant 0 : i32
    %144 = tpu.memref_slice %arg2[%143, %c0_i32_86] : memref<512x128xf32, #tpu.memory_space<any>> -> memref<1x128xf32, #tpu.memory_space<any>>
    %c4_i32_87 = arith.constant 4 : i32
    %c0_i32_88 = arith.constant 0 : i32
    %145 = tpu.memref_slice %arg4[%c4_i32_87, %c0_i32_88] : memref<16x128xf32, #tpu.memory_space<vmem>> -> memref<1x128xf32, #tpu.memory_space<vmem>>
    %146 = tpu.memref_slice %arg5[%c4_i32_85] : memref<16x!tpu.dma_semaphore, #tpu.memory_space<semaphore_mem>> -> memref<1x!tpu.dma_semaphore, #tpu.memory_space<semaphore_mem>>
    %147 = tpu.memref_squeeze %146 : memref<1x!tpu.dma_semaphore, #tpu.memory_space<semaphore_mem>> -> memref<!tpu.dma_semaphore, #tpu.memory_space<semaphore_mem>>
    tpu.wait_dma2 semaphore(%147 : memref<!tpu.dma_semaphore, #tpu.memory_space<semaphore_mem>>) src(%144 : memref<1x128xf32, #tpu.memory_space<any>>) dst(%145 : memref<1x128xf32, #tpu.memory_space<vmem>>)
    %c5_i32_89 = arith.constant 5 : i32
    %148 = arith.addi %0, %c5_i32_89 : i32
    %149 = arith.index_cast %148 : i32 to index
    %150 = memref.load %arg1[%149] : memref<16xi32, #tpu.memory_space<smem>>
    %c5_i32_90 = arith.constant 5 : i32
    %c0_i32_91 = arith.constant 0 : i32
    %151 = tpu.memref_slice %arg2[%150, %c0_i32_91] : memref<512x128xf32, #tpu.memory_space<any>> -> memref<1x128xf32, #tpu.memory_space<any>>
    %c5_i32_92 = arith.constant 5 : i32
    %c0_i32_93 = arith.constant 0 : i32
    %152 = tpu.memref_slice %arg4[%c5_i32_92, %c0_i32_93] : memref<16x128xf32, #tpu.memory_space<vmem>> -> memref<1x128xf32, #tpu.memory_space<vmem>>
    %153 = tpu.memref_slice %arg5[%c5_i32_90] : memref<16x!tpu.dma_semaphore, #tpu.memory_space<semaphore_mem>> -> memref<1x!tpu.dma_semaphore, #tpu.memory_space<semaphore_mem>>
    %154 = tpu.memref_squeeze %153 : memref<1x!tpu.dma_semaphore, #tpu.memory_space<semaphore_mem>> -> memref<!tpu.dma_semaphore, #tpu.memory_space<semaphore_mem>>
    tpu.wait_dma2 semaphore(%154 : memref<!tpu.dma_semaphore, #tpu.memory_space<semaphore_mem>>) src(%151 : memref<1x128xf32, #tpu.memory_space<any>>) dst(%152 : memref<1x128xf32, #tpu.memory_space<vmem>>)
    %c6_i32_94 = arith.constant 6 : i32
    %155 = arith.addi %0, %c6_i32_94 : i32
    %156 = arith.index_cast %155 : i32 to index
    %157 = memref.load %arg1[%156] : memref<16xi32, #tpu.memory_space<smem>>
    %c6_i32_95 = arith.constant 6 : i32
    %c0_i32_96 = arith.constant 0 : i32
    %158 = tpu.memref_slice %arg2[%157, %c0_i32_96] : memref<512x128xf32, #tpu.memory_space<any>> -> memref<1x128xf32, #tpu.memory_space<any>>
    %c6_i32_97 = arith.constant 6 : i32
    %c0_i32_98 = arith.constant 0 : i32
    %159 = tpu.memref_slice %arg4[%c6_i32_97, %c0_i32_98] : memref<16x128xf32, #tpu.memory_space<vmem>> -> memref<1x128xf32, #tpu.memory_space<vmem>>
    %160 = tpu.memref_slice %arg5[%c6_i32_95] : memref<16x!tpu.dma_semaphore, #tpu.memory_space<semaphore_mem>> -> memref<1x!tpu.dma_semaphore, #tpu.memory_space<semaphore_mem>>
    %161 = tpu.memref_squeeze %160 : memref<1x!tpu.dma_semaphore, #tpu.memory_space<semaphore_mem>> -> memref<!tpu.dma_semaphore, #tpu.memory_space<semaphore_mem>>
    tpu.wait_dma2 semaphore(%161 : memref<!tpu.dma_semaphore, #tpu.memory_space<semaphore_mem>>) src(%158 : memref<1x128xf32, #tpu.memory_space<any>>) dst(%159 : memref<1x128xf32, #tpu.memory_space<vmem>>)
    %c7_i32_99 = arith.constant 7 : i32
    %162 = arith.addi %0, %c7_i32_99 : i32
    %163 = arith.index_cast %162 : i32 to index
    %164 = memref.load %arg1[%163] : memref<16xi32, #tpu.memory_space<smem>>
    %c7_i32_100 = arith.constant 7 : i32
    %c0_i32_101 = arith.constant 0 : i32
    %165 = tpu.memref_slice %arg2[%164, %c0_i32_101] : memref<512x128xf32, #tpu.memory_space<any>> -> memref<1x128xf32, #tpu.memory_space<any>>
    %c7_i32_102 = arith.constant 7 : i32
    %c0_i32_103 = arith.constant 0 : i32
    %166 = tpu.memref_slice %arg4[%c7_i32_102, %c0_i32_103] : memref<16x128xf32, #tpu.memory_space<vmem>> -> memref<1x128xf32, #tpu.memory_space<vmem>>
    %167 = tpu.memref_slice %arg5[%c7_i32_100] : memref<16x!tpu.dma_semaphore, #tpu.memory_space<semaphore_mem>> -> memref<1x!tpu.dma_semaphore, #tpu.memory_space<semaphore_mem>>
    %168 = tpu.memref_squeeze %167 : memref<1x!tpu.dma_semaphore, #tpu.memory_space<semaphore_mem>> -> memref<!tpu.dma_semaphore, #tpu.memory_space<semaphore_mem>>
    tpu.wait_dma2 semaphore(%168 : memref<!tpu.dma_semaphore, #tpu.memory_space<semaphore_mem>>) src(%165 : memref<1x128xf32, #tpu.memory_space<any>>) dst(%166 : memref<1x128xf32, #tpu.memory_space<vmem>>)
    %c8_i32_104 = arith.constant 8 : i32
    %169 = arith.addi %0, %c8_i32_104 : i32
    %170 = arith.index_cast %169 : i32 to index
    %171 = memref.load %arg1[%170] : memref<16xi32, #tpu.memory_space<smem>>
    %c8_i32_105 = arith.constant 8 : i32
    %c0_i32_106 = arith.constant 0 : i32
    %172 = tpu.memref_slice %arg2[%171, %c0_i32_106] : memref<512x128xf32, #tpu.memory_space<any>> -> memref<1x128xf32, #tpu.memory_space<any>>
    %c8_i32_107 = arith.constant 8 : i32
    %c0_i32_108 = arith.constant 0 : i32
    %173 = tpu.memref_slice %arg4[%c8_i32_107, %c0_i32_108] : memref<16x128xf32, #tpu.memory_space<vmem>> -> memref<1x128xf32, #tpu.memory_space<vmem>>
    %174 = tpu.memref_slice %arg5[%c8_i32_105] : memref<16x!tpu.dma_semaphore, #tpu.memory_space<semaphore_mem>> -> memref<1x!tpu.dma_semaphore, #tpu.memory_space<semaphore_mem>>
    %175 = tpu.memref_squeeze %174 : memref<1x!tpu.dma_semaphore, #tpu.memory_space<semaphore_mem>> -> memref<!tpu.dma_semaphore, #tpu.memory_space<semaphore_mem>>
    tpu.wait_dma2 semaphore(%175 : memref<!tpu.dma_semaphore, #tpu.memory_space<semaphore_mem>>) src(%172 : memref<1x128xf32, #tpu.memory_space<any>>) dst(%173 : memref<1x128xf32, #tpu.memory_space<vmem>>)
    %c9_i32_109 = arith.constant 9 : i32
    %176 = arith.addi %0, %c9_i32_109 : i32
    %177 = arith.index_cast %176 : i32 to index
    %178 = memref.load %arg1[%177] : memref<16xi32, #tpu.memory_space<smem>>
    %c9_i32_110 = arith.constant 9 : i32
    %c0_i32_111 = arith.constant 0 : i32
    %179 = tpu.memref_slice %arg2[%178, %c0_i32_111] : memref<512x128xf32, #tpu.memory_space<any>> -> memref<1x128xf32, #tpu.memory_space<any>>
    %c9_i32_112 = arith.constant 9 : i32
    %c0_i32_113 = arith.constant 0 : i32
    %180 = tpu.memref_slice %arg4[%c9_i32_112, %c0_i32_113] : memref<16x128xf32, #tpu.memory_space<vmem>> -> memref<1x128xf32, #tpu.memory_space<vmem>>
    %181 = tpu.memref_slice %arg5[%c9_i32_110] : memref<16x!tpu.dma_semaphore, #tpu.memory_space<semaphore_mem>> -> memref<1x!tpu.dma_semaphore, #tpu.memory_space<semaphore_mem>>
    %182 = tpu.memref_squeeze %181 : memref<1x!tpu.dma_semaphore, #tpu.memory_space<semaphore_mem>> -> memref<!tpu.dma_semaphore, #tpu.memory_space<semaphore_mem>>
    tpu.wait_dma2 semaphore(%182 : memref<!tpu.dma_semaphore, #tpu.memory_space<semaphore_mem>>) src(%179 : memref<1x128xf32, #tpu.memory_space<any>>) dst(%180 : memref<1x128xf32, #tpu.memory_space<vmem>>)
    %c10_i32_114 = arith.constant 10 : i32
    %183 = arith.addi %0, %c10_i32_114 : i32
    %184 = arith.index_cast %183 : i32 to index
    %185 = memref.load %arg1[%184] : memref<16xi32, #tpu.memory_space<smem>>
    %c10_i32_115 = arith.constant 10 : i32
    %c0_i32_116 = arith.constant 0 : i32
    %186 = tpu.memref_slice %arg2[%185, %c0_i32_116] : memref<512x128xf32, #tpu.memory_space<any>> -> memref<1x128xf32, #tpu.memory_space<any>>
    %c10_i32_117 = arith.constant 10 : i32
    %c0_i32_118 = arith.constant 0 : i32
    %187 = tpu.memref_slice %arg4[%c10_i32_117, %c0_i32_118] : memref<16x128xf32, #tpu.memory_space<vmem>> -> memref<1x128xf32, #tpu.memory_space<vmem>>
    %188 = tpu.memref_slice %arg5[%c10_i32_115] : memref<16x!tpu.dma_semaphore, #tpu.memory_space<semaphore_mem>> -> memref<1x!tpu.dma_semaphore, #tpu.memory_space<semaphore_mem>>
    %189 = tpu.memref_squeeze %188 : memref<1x!tpu.dma_semaphore, #tpu.memory_space<semaphore_mem>> -> memref<!tpu.dma_semaphore, #tpu.memory_space<semaphore_mem>>
    tpu.wait_dma2 semaphore(%189 : memref<!tpu.dma_semaphore, #tpu.memory_space<semaphore_mem>>) src(%186 : memref<1x128xf32, #tpu.memory_space<any>>) dst(%187 : memref<1x128xf32, #tpu.memory_space<vmem>>)
    %c11_i32_119 = arith.constant 11 : i32
    %190 = arith.addi %0, %c11_i32_119 : i32
    %191 = arith.index_cast %190 : i32 to index
    %192 = memref.load %arg1[%191] : memref<16xi32, #tpu.memory_space<smem>>
    %c11_i32_120 = arith.constant 11 : i32
    %c0_i32_121 = arith.constant 0 : i32
    %193 = tpu.memref_slice %arg2[%192, %c0_i32_121] : memref<512x128xf32, #tpu.memory_space<any>> -> memref<1x128xf32, #tpu.memory_space<any>>
    %c11_i32_122 = arith.constant 11 : i32
    %c0_i32_123 = arith.constant 0 : i32
    %194 = tpu.memref_slice %arg4[%c11_i32_122, %c0_i32_123] : memref<16x128xf32, #tpu.memory_space<vmem>> -> memref<1x128xf32, #tpu.memory_space<vmem>>
    %195 = tpu.memref_slice %arg5[%c11_i32_120] : memref<16x!tpu.dma_semaphore, #tpu.memory_space<semaphore_mem>> -> memref<1x!tpu.dma_semaphore, #tpu.memory_space<semaphore_mem>>
    %196 = tpu.memref_squeeze %195 : memref<1x!tpu.dma_semaphore, #tpu.memory_space<semaphore_mem>> -> memref<!tpu.dma_semaphore, #tpu.memory_space<semaphore_mem>>
    tpu.wait_dma2 semaphore(%196 : memref<!tpu.dma_semaphore, #tpu.memory_space<semaphore_mem>>) src(%193 : memref<1x128xf32, #tpu.memory_space<any>>) dst(%194 : memref<1x128xf32, #tpu.memory_space<vmem>>)
    %c12_i32_124 = arith.constant 12 : i32
    %197 = arith.addi %0, %c12_i32_124 : i32
    %198 = arith.index_cast %197 : i32 to index
    %199 = memref.load %arg1[%198] : memref<16xi32, #tpu.memory_space<smem>>
    %c12_i32_125 = arith.constant 12 : i32
    %c0_i32_126 = arith.constant 0 : i32
    %200 = tpu.memref_slice %arg2[%199, %c0_i32_126] : memref<512x128xf32, #tpu.memory_space<any>> -> memref<1x128xf32, #tpu.memory_space<any>>
    %c12_i32_127 = arith.constant 12 : i32
    %c0_i32_128 = arith.constant 0 : i32
    %201 = tpu.memref_slice %arg4[%c12_i32_127, %c0_i32_128] : memref<16x128xf32, #tpu.memory_space<vmem>> -> memref<1x128xf32, #tpu.memory_space<vmem>>
    %202 = tpu.memref_slice %arg5[%c12_i32_125] : memref<16x!tpu.dma_semaphore, #tpu.memory_space<semaphore_mem>> -> memref<1x!tpu.dma_semaphore, #tpu.memory_space<semaphore_mem>>
    %203 = tpu.memref_squeeze %202 : memref<1x!tpu.dma_semaphore, #tpu.memory_space<semaphore_mem>> -> memref<!tpu.dma_semaphore, #tpu.memory_space<semaphore_mem>>
    tpu.wait_dma2 semaphore(%203 : memref<!tpu.dma_semaphore, #tpu.memory_space<semaphore_mem>>) src(%200 : memref<1x128xf32, #tpu.memory_space<any>>) dst(%201 : memref<1x128xf32, #tpu.memory_space<vmem>>)
    %c13_i32_129 = arith.constant 13 : i32
    %204 = arith.addi %0, %c13_i32_129 : i32
    %205 = arith.index_cast %204 : i32 to index
    %206 = memref.load %arg1[%205] : memref<16xi32, #tpu.memory_space<smem>>
    %c13_i32_130 = arith.constant 13 : i32
    %c0_i32_131 = arith.constant 0 : i32
    %207 = tpu.memref_slice %arg2[%206, %c0_i32_131] : memref<512x128xf32, #tpu.memory_space<any>> -> memref<1x128xf32, #tpu.memory_space<any>>
    %c13_i32_132 = arith.constant 13 : i32
    %c0_i32_133 = arith.constant 0 : i32
    %208 = tpu.memref_slice %arg4[%c13_i32_132, %c0_i32_133] : memref<16x128xf32, #tpu.memory_space<vmem>> -> memref<1x128xf32, #tpu.memory_space<vmem>>
    %209 = tpu.memref_slice %arg5[%c13_i32_130] : memref<16x!tpu.dma_semaphore, #tpu.memory_space<semaphore_mem>> -> memref<1x!tpu.dma_semaphore, #tpu.memory_space<semaphore_mem>>
    %210 = tpu.memref_squeeze %209 : memref<1x!tpu.dma_semaphore, #tpu.memory_space<semaphore_mem>> -> memref<!tpu.dma_semaphore, #tpu.memory_space<semaphore_mem>>
    tpu.wait_dma2 semaphore(%210 : memref<!tpu.dma_semaphore, #tpu.memory_space<semaphore_mem>>) src(%207 : memref<1x128xf32, #tpu.memory_space<any>>) dst(%208 : memref<1x128xf32, #tpu.memory_space<vmem>>)
    %c14_i32_134 = arith.constant 14 : i32
    %211 = arith.addi %0, %c14_i32_134 : i32
    %212 = arith.index_cast %211 : i32 to index
    %213 = memref.load %arg1[%212] : memref<16xi32, #tpu.memory_space<smem>>
    %c14_i32_135 = arith.constant 14 : i32
    %c0_i32_136 = arith.constant 0 : i32
    %214 = tpu.memref_slice %arg2[%213, %c0_i32_136] : memref<512x128xf32, #tpu.memory_space<any>> -> memref<1x128xf32, #tpu.memory_space<any>>
    %c14_i32_137 = arith.constant 14 : i32
    %c0_i32_138 = arith.constant 0 : i32
    %215 = tpu.memref_slice %arg4[%c14_i32_137, %c0_i32_138] : memref<16x128xf32, #tpu.memory_space<vmem>> -> memref<1x128xf32, #tpu.memory_space<vmem>>
    %216 = tpu.memref_slice %arg5[%c14_i32_135] : memref<16x!tpu.dma_semaphore, #tpu.memory_space<semaphore_mem>> -> memref<1x!tpu.dma_semaphore, #tpu.memory_space<semaphore_mem>>
    %217 = tpu.memref_squeeze %216 : memref<1x!tpu.dma_semaphore, #tpu.memory_space<semaphore_mem>> -> memref<!tpu.dma_semaphore, #tpu.memory_space<semaphore_mem>>
    tpu.wait_dma2 semaphore(%217 : memref<!tpu.dma_semaphore, #tpu.memory_space<semaphore_mem>>) src(%214 : memref<1x128xf32, #tpu.memory_space<any>>) dst(%215 : memref<1x128xf32, #tpu.memory_space<vmem>>)
    %c15_i32_139 = arith.constant 15 : i32
    %218 = arith.addi %0, %c15_i32_139 : i32
    %219 = arith.index_cast %218 : i32 to index
    %220 = memref.load %arg1[%219] : memref<16xi32, #tpu.memory_space<smem>>
    %c15_i32_140 = arith.constant 15 : i32
    %c0_i32_141 = arith.constant 0 : i32
    %221 = tpu.memref_slice %arg2[%220, %c0_i32_141] : memref<512x128xf32, #tpu.memory_space<any>> -> memref<1x128xf32, #tpu.memory_space<any>>
    %c15_i32_142 = arith.constant 15 : i32
    %c0_i32_143 = arith.constant 0 : i32
    %222 = tpu.memref_slice %arg4[%c15_i32_142, %c0_i32_143] : memref<16x128xf32, #tpu.memory_space<vmem>> -> memref<1x128xf32, #tpu.memory_space<vmem>>
    %223 = tpu.memref_slice %arg5[%c15_i32_140] : memref<16x!tpu.dma_semaphore, #tpu.memory_space<semaphore_mem>> -> memref<1x!tpu.dma_semaphore, #tpu.memory_space<semaphore_mem>>
    %224 = tpu.memref_squeeze %223 : memref<1x!tpu.dma_semaphore, #tpu.memory_space<semaphore_mem>> -> memref<!tpu.dma_semaphore, #tpu.memory_space<semaphore_mem>>
    tpu.wait_dma2 semaphore(%224 : memref<!tpu.dma_semaphore, #tpu.memory_space<semaphore_mem>>) src(%221 : memref<1x128xf32, #tpu.memory_space<any>>) dst(%222 : memref<1x128xf32, #tpu.memory_space<vmem>>)
    %c0 = arith.constant 0 : index
    %c0_144 = arith.constant 0 : index
    %225 = vector.load %arg4[%c0, %c0_144] : memref<16x128xf32, #tpu.memory_space<vmem>>, vector<16x128xf32>
    %c0_145 = arith.constant 0 : index
    %c0_146 = arith.constant 0 : index
    %226 = vector.load %arg3[%c0_145, %c0_146] : memref<16x128xf32, #tpu.memory_space<vmem>>, vector<16x128xf32>
    tpu.vector_store %arg3[%c0_145, %c0_146], %225 {strides = array<i32>} : memref<16x128xf32, #tpu.memory_space<vmem>>, vector<16x128xf32>,
    return
  }
  func.func @transform_1(%arg0: i32, %arg1: memref<16xi32, #tpu.memory_space<smem>>) -> (i32, i32) {
    %c0_i32 = arith.constant 0 : i32
    %c0_i32_0 = arith.constant 0 : i32
    return %arg0, %c0_i32 : i32, i32
  }
}

</mosaic_0001>

<bundles_post_ra>
// kernel: tpu_custom_call.1
= control target key start
LH: loop header
LB: loop body
LE: loop exit
PB: predicated region body
PF: predicated region fallthrough
CT: control target
= control target key end

     0   :  { %s1335_s0 = inlined_call_operand.hbm [shape: s32[16], index: 0, kind: input, shape index: {}]   ;;  %s1336_s1 = inlined_call_operand.hbm [shape: f32[512,128], index: 1, kind: input, shape index: {}]   ;;  %s1337_s2 = inlined_call_operand.hbm [shape: f32[16,128], index: 2, kind: output, shape index: {}]  }
   0x1   :  { %s561_s11 = scalar_lea.hbm %s1335_s0, 16 }
   0x2   :  { %p562_p0 = scmp.ne.s32.totalorder %s1335_s0, %s561_s11  ;;  %p565_p1 = scmp.lt.u32.totalorder %s561_s11, %s1335_s0 }
   0x4   :  { %p567_p2 = pnand %p565_p1, %p562_p0 }
   0x6   :  { %570 = shalt.err (!%p567_p2)  }
   0x7   :  { %s1013_s16 = smov [#allocation5]  }
   0x8   :  { %8 = dma.hbm_to_smem %s1335_s0, 16, %s1013_s16, [#allocation4] }
   0x9   :  { %977 = dma.done.wait [#allocation4], 16 }
   0xa   :  { %978 = vsyncadd [#allocation4], 4294967280 }
   0xb   :  { %10 = sfence }
   0xc   :  { %11 = vsyncpa [#allocation7], 0  ;;  %s13_s19 = sld [smem:[#allocation5]]  ;;  %s1014_s20 = smov [#allocation2]  }
   0xd   :  { %s23_s21 = sshll.u32 %s1014_s20, 4  ;;  %s1060_s22 = sld [smem:[#allocation5 + $0x1]]  ;;  %s1062_s21 = int_to_ptr.vmem [resolvable:$true] %s23_s21 }
   0xe   :  { %s1015_s23 = smov [#allocation2 + $0x1]   ;;  %s1064_s25 = sld [smem:[#allocation5 + $0x2]] }
   0xf   :  { %s40_s24 = sshll.u32 %s1015_s23, 4  ;;  %s1016_s26 = smov [#allocation2 + $0x2]   ;;  %s1066_s24 = int_to_ptr.vmem [resolvable:$true] %s40_s24 }
  0x10   :  { %s57_s0 = sshll.u32 %s1016_s26, 4  ;;  %s1068_s27 = sld [smem:[#allocation5 + $0x3]]  ;;  %s1070_s0 = int_to_ptr.vmem [resolvable:$true] %s57_s0 }
  0x11   :  { %s1079_s8 = scalar_lea.hbm %s1336_s1, 8192 }
  0x12   :  { %s494_s28 = sshll.u32 %s13_s19, 4 }
  0x13   :  { %s15_s3 = scalar_lea.hbm %s1336_s1, %s494_s28  ;;  %s496_s4 = sshll.u32 %s1060_s22, 4 }
  0x14   :  { %s571_s5 = scalar_lea.hbm %s15_s3, 16  ;;  %p574_p4 = scmp.lt.u32.totalorder %s15_s3, %s1336_s1 }
  0x15   :  { %p572_p3 = scmp.ne.s32.totalorder %s15_s3, %s571_s5  ;;  %p575_p5 = scmp.lt.u32.totalorder %s1079_s8, %s571_s5 }
  0x16   :  { %p577_p7 = scmp.lt.u32.totalorder %s571_s5, %s15_s3 }
  0x17   :  { %p576_p6 = por %p575_p5, %p574_p4 }
  0x19   :  { %p578_p8 = por %p577_p7, %p576_p6 }
  0x1b   :  { %p579_p9 = pnand %p578_p8, %p572_p3 }
  0x1d   :  { %582 = shalt.err (!%p579_p9)  }
  0x1e   :  { %s583_s11 = scalar_lea.vmem %s1062_s21, 16  ;;  %s1088_s12 = scalar_lea.vmem %s1062_s21, 256 }
  0x1f   :  { %p584_p10 = scmp.ne.s32.totalorder %s1062_s21, %s583_s11  ;;  %p588_p11 = scmp.lt.s32.totalorder %s1062_s21, %s1062_s21 }
  0x20   :  { %p589_p12 = scmp.lt.s32.totalorder %s1088_s12, %s583_s11 }
  0x22   :  { %p590_p13 = por %p589_p12, %p588_p11 }
  0x24   :  { %p591_p0 = pnand %p590_p13, %p584_p10 }
  0x26   :  { %594 = shalt.err (!%p591_p0)  }
  0x27   :  { %26 = dma.hbm_to_vmem [thread:$0]  %s15_s3, 16, %s1062_s21, [#allocation3] }
  0x28   :  { %s30_s15 = scalar_lea.hbm %s1336_s1, %s496_s4  ;;  %s498_s16 = sshll.u32 %s1064_s25, 4 }
  0x29   :  { %s595_s17 = scalar_lea.hbm %s30_s15, 16  ;;  %p598_p2 = scmp.lt.u32.totalorder %s30_s15, %s1336_s1 }
  0x2a   :  { %p596_p1 = scmp.ne.s32.totalorder %s30_s15, %s595_s17  ;;  %p599_p3 = scmp.lt.u32.totalorder %s1079_s8, %s595_s17 }
  0x2b   :  { %p601_p5 = scmp.lt.u32.totalorder %s595_s17, %s30_s15 }
  0x2c   :  { %p600_p4 = por %p599_p3, %p598_p2 }
  0x2e   :  { %p602_p6 = por %p601_p5, %p600_p4 }
  0x30   :  { %p603_p7 = pnand %p602_p6, %p596_p1 }
  0x32   :  { %606 = shalt.err (!%p603_p7)  }
  0x33   :  { %s607_s20 = scalar_lea.vmem %s1066_s24, 16  ;;  %p612_p9 = scmp.lt.s32.totalorder %s1066_s24, %s1062_s21 }
  0x34   :  { %p608_p8 = scmp.ne.s32.totalorder %s1066_s24, %s607_s20  ;;  %p613_p10 = scmp.lt.s32.totalorder %s1088_s12, %s607_s20 }
  0x36   :  { %p614_p11 = por %p613_p10, %p612_p9 }
  0x38   :  { %p615_p12 = pnand %p614_p11, %p608_p8 }
  0x3a   :  { %618 = shalt.err (!%p615_p12)  }
  0x3b   :  { %43 = dma.hbm_to_vmem [thread:$0]  %s30_s15, 16, %s1066_s24, [#allocation3 + $0x1] }
  0x3c   :  { %s47_s25 = scalar_lea.hbm %s1336_s1, %s498_s16  ;;  %s500_s26 = sshll.u32 %s1068_s27, 4 }
  0x3d   :  { %s619_s28 = scalar_lea.hbm %s47_s25, 16  ;;  %p622_p0 = scmp.lt.u32.totalorder %s47_s25, %s1336_s1 }
  0x3e   :  { %p620_p13 = scmp.ne.s32.totalorder %s47_s25, %s619_s28  ;;  %p623_p1 = scmp.lt.u32.totalorder %s1079_s8, %s619_s28 }
  0x3f   :  { %p625_p3 = scmp.lt.u32.totalorder %s619_s28, %s47_s25 }
  0x40   :  { %p624_p2 = por %p623_p1, %p622_p0 }
  0x42   :  { %p626_p4 = por %p625_p3, %p624_p2 }
  0x44   :  { %p627_p5 = pnand %p626_p4, %p620_p13 }
  0x46   :  { %630 = shalt.err (!%p627_p5)  }
  0x47   :  { %s631_s24 = scalar_lea.vmem %s1070_s0, 16  ;;  %p636_p7 = scmp.lt.s32.totalorder %s1070_s0, %s1062_s21 }
  0x48   :  { %p632_p6 = scmp.ne.s32.totalorder %s1070_s0, %s631_s24  ;;  %p637_p8 = scmp.lt.s32.totalorder %s1088_s12, %s631_s24 }
  0x4a   :  { %p638_p9 = por %p637_p8, %p636_p7 }
  0x4c   :  { %p639_p10 = pnand %p638_p9, %p632_p6 }
  0x4e   :  { %642 = shalt.err (!%p639_p10)  }
  0x4f   :  { %60 = dma.hbm_to_vmem [thread:$0]  %s47_s25, 16, %s1070_s0, [#allocation3 + $0x2] }
  0x50   :  { %s64_s4 = scalar_lea.hbm %s1336_s1, %s500_s26  ;;  %s1017_s5 = smov [#allocation2 + $0x3]  }
  0x51   :  { %s74_s6 = sshll.u32 %s1017_s5, 4  ;;  %s1125_s7 = sld [smem:[#allocation5 + $0x4]]  ;;  %s75_s6 = int_to_ptr.vmem [resolvable:$true] %s74_s6 }
  0x52   :  { %s643_s9 = scalar_lea.hbm %s64_s4, 16  ;;  %p646_p12 = scmp.lt.u32.totalorder %s64_s4, %s1336_s1 }
  0x53   :  { %p644_p11 = scmp.ne.s32.totalorder %s64_s4, %s643_s9  ;;  %p647_p13 = scmp.lt.u32.totalorder %s1079_s8, %s643_s9 }
  0x54   :  { %p649_p1 = scmp.lt.u32.totalorder %s643_s9, %s64_s4 }
  0x55   :  { %p648_p0 = por %p647_p13, %p646_p12 }
  0x57   :  { %p650_p2 = por %p649_p1, %p648_p0 }
  0x59   :  { %p651_p3 = pnand %p650_p2, %p644_p11 }
  0x5b   :  { %654 = shalt.err (!%p651_p3)  }
  0x5c   :  { %s655_s0 = scalar_lea.vmem %s75_s6, 16  ;;  %p660_p5 = scmp.lt.s32.totalorder %s75_s6, %s1062_s21 }
  0x5d   :  { %p656_p4 = scmp.ne.s32.totalorder %s75_s6, %s655_s0  ;;  %p661_p6 = scmp.lt.s32.totalorder %s1088_s12, %s655_s0 }
  0x5f   :  { %p662_p7 = por %p661_p6, %p660_p5 }
  0x61   :  { %p663_p8 = pnand %p662_p7, %p656_p4 }
  0x63   :  { %666 = shalt.err (!%p663_p8)  }
  0x64   :  { %77 = dma.hbm_to_vmem [thread:$0]  %s64_s4, 16, %s75_s6, [#allocation3 + $0x3] }
  0x65   :  { %s1018_s13 = smov [#allocation2 + $0x4]   ;;  %s1133_s15 = sld [smem:[#allocation5 + $0x5]] }
  0x66   :  { %s91_s14 = sshll.u32 %s1018_s13, 4  ;;  %s1019_s16 = smov [#allocation2 + $0x5]   ;;  %s92_s14 = int_to_ptr.vmem [resolvable:$true] %s91_s14 }
  0x67   :  { %s108_s17 = sshll.u32 %s1019_s16, 4  ;;  %s1135_s18 = sld [smem:[#allocation5 + $0x6]]  ;;  %s1138_s17 = int_to_ptr.vmem [resolvable:$true] %s108_s17 }
  0x68   :  { %s502_s19 = sshll.u32 %s1125_s7, 4 }
  0x69   :  { %s81_s23 = scalar_lea.hbm %s1336_s1, %s502_s19 }
  0x6a   :  { %s667_s25 = scalar_lea.hbm %s81_s23, 16  ;;  %p670_p10 = scmp.lt.u32.totalorder %s81_s23, %s1336_s1 }
  0x6b   :  { %p668_p9 = scmp.ne.s32.totalorder %s81_s23, %s667_s25  ;;  %p671_p11 = scmp.lt.u32.totalorder %s1079_s8, %s667_s25 }
  0x6c   :  { %p673_p13 = scmp.lt.u32.totalorder %s667_s25, %s81_s23 }
  0x6d   :  { %p672_p12 = por %p671_p11, %p670_p10 }
  0x6f   :  { %p674_p0 = por %p673_p13, %p672_p12 }
  0x71   :  { %p675_p1 = pnand %p674_p0, %p668_p9 }
  0x73   :  { %678 = shalt.err (!%p675_p1)  }
  0x74   :  { %s679_s29 = scalar_lea.vmem %s92_s14, 16  ;;  %p684_p3 = scmp.lt.s32.totalorder %s92_s14, %s1062_s21 }
  0x75   :  { %p680_p2 = scmp.ne.s32.totalorder %s92_s14, %s679_s29  ;;  %p685_p4 = scmp.lt.s32.totalorder %s1088_s12, %s679_s29 }
  0x77   :  { %p686_p5 = por %p685_p4, %p684_p3 }
  0x79   :  { %p687_p6 = pnand %p686_p5, %p680_p2 }
  0x7b   :  { %690 = shalt.err (!%p687_p6)  }
  0x7c   :  { %94 = dma.hbm_to_vmem [thread:$0]  %s81_s23, 16, %s92_s14, [#allocation3 + $0x4] }
  0x7d   :  { %s504_s30 = sshll.u32 %s1133_s15, 4  ;;  %s1020_s24 = smov [#allocation2 + $0x6]  }
  0x7e   :  { %s125_s27 = sshll.u32 %s1020_s24, 4  ;;  %s98_s5 = scalar_lea.hbm %s1336_s1, %s504_s30  ;;  %s1153_s27 = int_to_ptr.vmem [resolvable:$true] %s125_s27 }
  0x7f   :  { %s691_s6 = scalar_lea.hbm %s98_s5, 16  ;;  %p694_p8 = scmp.lt.u32.totalorder %s98_s5, %s1336_s1 }
  0x80   :  { %p692_p7 = scmp.ne.s32.totalorder %s98_s5, %s691_s6  ;;  %p695_p9 = scmp.lt.u32.totalorder %s1079_s8, %s691_s6 }
  0x81   :  { %p697_p11 = scmp.lt.u32.totalorder %s691_s6, %s98_s5 }
  0x82   :  { %p696_p10 = por %p695_p9, %p694_p8 }
  0x84   :  { %p698_p12 = por %p697_p11, %p696_p10 }
  0x86   :  { %p699_p13 = pnand %p698_p12, %p692_p7 }
  0x88   :  { %702 = shalt.err (!%p699_p13)  }
  0x89   :  { %s703_s10 = scalar_lea.vmem %s1138_s17, 16  ;;  %p708_p1 = scmp.lt.s32.totalorder %s1138_s17, %s1062_s21 }
  0x8a   :  { %p704_p0 = scmp.ne.s32.totalorder %s1138_s17, %s703_s10  ;;  %p709_p2 = scmp.lt.s32.totalorder %s1088_s12, %s703_s10 }
  0x8c   :  { %p710_p3 = por %p709_p2, %p708_p1 }
  0x8e   :  { %p711_p4 = pnand %p710_p3, %p704_p0 }
  0x90   :  { %714 = shalt.err (!%p711_p4)  }
  0x91   :  { %111 = dma.hbm_to_vmem [thread:$0]  %s98_s5, 16, %s1138_s17, [#allocation3 + $0x5] }
  0x92   :  { %s506_s11 = sshll.u32 %s1135_s18, 4  ;;  %s1166_s0 = sld [smem:[#allocation5 + $0x7]] }
  0x93   :  { %s115_s15 = scalar_lea.hbm %s1336_s1, %s506_s11 }
  0x94   :  { %s715_s16 = scalar_lea.hbm %s115_s15, 16  ;;  %p718_p6 = scmp.lt.u32.totalorder %s115_s15, %s1336_s1 }
  0x95   :  { %p716_p5 = scmp.ne.s32.totalorder %s115_s15, %s715_s16  ;;  %p719_p7 = scmp.lt.u32.totalorder %s1079_s8, %s715_s16 }
  0x96   :  { %p721_p9 = scmp.lt.u32.totalorder %s715_s16, %s115_s15 }
  0x97   :  { %p720_p8 = por %p719_p7, %p718_p6 }
  0x99   :  { %p722_p10 = por %p721_p9, %p720_p8 }
  0x9b   :  { %p723_p11 = pnand %p722_p10, %p716_p5 }
  0x9d   :  { %726 = shalt.err (!%p723_p11)  }
  0x9e   :  { %s727_s17 = scalar_lea.vmem %s1153_s27, 16  ;;  %p732_p13 = scmp.lt.s32.totalorder %s1153_s27, %s1062_s21 }
  0x9f   :  { %p728_p12 = scmp.ne.s32.totalorder %s1153_s27, %s727_s17  ;;  %p733_p0 = scmp.lt.s32.totalorder %s1088_s12, %s727_s17 }
  0xa1   :  { %p734_p1 = por %p733_p0, %p732_p13 }
  0xa3   :  { %p735_p2 = pnand %p734_p1, %p728_p12 }
  0xa5   :  { %738 = shalt.err (!%p735_p2)  }
  0xa6   :  { %128 = dma.hbm_to_vmem [thread:$0]  %s115_s15, 16, %s1153_s27, [#allocation3 + $0x6] }
  0xa7   :  { %s1021_s18 = smov [#allocation2 + $0x7]   ;;  %s1181_s23 = sld [smem:[#allocation5 + $0x8]] }
  0xa8   :  { %s142_s22 = sshll.u32 %s1021_s18, 4  ;;  %s1022_s25 = smov [#allocation2 + $0x8]   ;;  %s143_s22 = int_to_ptr.vmem [resolvable:$true] %s142_s22 }
  0xa9   :  { %s159_s26 = sshll.u32 %s1022_s25, 4  ;;  %s1183_s28 = sld [smem:[#allocation5 + $0x9]]  ;;  %s1186_s26 = int_to_ptr.vmem [resolvable:$true] %s159_s26 }
  0xaa   :  { %s508_s29 = sshll.u32 %s1166_s0, 4 }
  0xab   :  { %s132_s3 = scalar_lea.hbm %s1336_s1, %s508_s29 }
  0xac   :  { %s739_s4 = scalar_lea.hbm %s132_s3, 16  ;;  %p742_p4 = scmp.lt.u32.totalorder %s132_s3, %s1336_s1 }
  0xad   :  { %p740_p3 = scmp.ne.s32.totalorder %s132_s3, %s739_s4  ;;  %p743_p5 = scmp.lt.u32.totalorder %s1079_s8, %s739_s4 }
  0xae   :  { %p745_p7 = scmp.lt.u32.totalorder %s739_s4, %s132_s3 }
  0xaf   :  { %p744_p6 = por %p743_p5, %p742_p4 }
  0xb1   :  { %p746_p8 = por %p745_p7, %p744_p6 }
  0xb3   :  { %p747_p9 = pnand %p746_p8, %p740_p3 }
  0xb5   :  { %750 = shalt.err (!%p747_p9)  }
  0xb6   :  { %s751_s6 = scalar_lea.vmem %s143_s22, 16  ;;  %p756_p11 = scmp.lt.s32.totalorder %s143_s22, %s1062_s21 }
  0xb7   :  { %p752_p10 = scmp.ne.s32.totalorder %s143_s22, %s751_s6  ;;  %p757_p12 = scmp.lt.s32.totalorder %s1088_s12, %s751_s6 }
  0xb9   :  { %p758_p13 = por %p757_p12, %p756_p11 }
  0xbb   :  { %p759_p0 = pnand %p758_p13, %p752_p10 }
  0xbd   :  { %762 = shalt.err (!%p759_p0)  }
  0xbe   :  { %145 = dma.hbm_to_vmem [thread:$0]  %s132_s3, 16, %s143_s22, [#allocation3 + $0x7] }
  0xbf   :  { %s510_s7 = sshll.u32 %s1181_s23, 4  ;;  %s1023_s9 = smov [#allocation2 + $0x9]  }
  0xc0   :  { %s176_s10 = sshll.u32 %s1023_s9, 4  ;;  %s149_s13 = scalar_lea.hbm %s1336_s1, %s510_s7  ;;  %s1201_s10 = int_to_ptr.vmem [resolvable:$true] %s176_s10 }
  0xc1   :  { %s763_s14 = scalar_lea.hbm %s149_s13, 16  ;;  %p766_p2 = scmp.lt.u32.totalorder %s149_s13, %s1336_s1 }
  0xc2   :  { %p764_p1 = scmp.ne.s32.totalorder %s149_s13, %s763_s14  ;;  %p767_p3 = scmp.lt.u32.totalorder %s1079_s8, %s763_s14 }
  0xc3   :  { %p769_p5 = scmp.lt.u32.totalorder %s763_s14, %s149_s13 }
  0xc4   :  { %p768_p4 = por %p767_p3, %p766_p2 }
  0xc6   :  { %p770_p6 = por %p769_p5, %p768_p4 }
  0xc8   :  { %p771_p7 = pnand %p770_p6, %p764_p1 }
  0xca   :  { %774 = shalt.err (!%p771_p7)  }
  0xcb   :  { %s775_s19 = scalar_lea.vmem %s1186_s26, 16  ;;  %p780_p9 = scmp.lt.s32.totalorder %s1186_s26, %s1062_s21 }
  0xcc   :  { %p776_p8 = scmp.ne.s32.totalorder %s1186_s26, %s775_s19  ;;  %p781_p10 = scmp.lt.s32.totalorder %s1088_s12, %s775_s19 }
  0xce   :  { %p782_p11 = por %p781_p10, %p780_p9 }
  0xd0   :  { %p783_p12 = pnand %p782_p11, %p776_p8 }
  0xd2   :  { %786 = shalt.err (!%p783_p12)  }
  0xd3   :  { %162 = dma.hbm_to_vmem [thread:$0]  %s149_s13, 16, %s1186_s26, [#allocation3 + $0x8] }
  0xd4   :  { %s512_s20 = sshll.u32 %s1183_s28, 4  ;;  %s1214_s17 = sld [smem:[#allocation5 + $0xa]] }
  0xd5   :  { %s166_s23 = scalar_lea.hbm %s1336_s1, %s512_s20 }
  0xd6   :  { %s787_s25 = scalar_lea.hbm %s166_s23, 16  ;;  %p790_p0 = scmp.lt.u32.totalorder %s166_s23, %s1336_s1 }
  0xd7   :  { %p788_p13 = scmp.ne.s32.totalorder %s166_s23, %s787_s25  ;;  %p791_p1 = scmp.lt.u32.totalorder %s1079_s8, %s787_s25 }
  0xd8   :  { %p793_p3 = scmp.lt.u32.totalorder %s787_s25, %s166_s23 }
  0xd9   :  { %p792_p2 = por %p791_p1, %p790_p0 }
  0xdb   :  { %p794_p4 = por %p793_p3, %p792_p2 }
  0xdd   :  { %p795_p5 = pnand %p794_p4, %p788_p13 }
  0xdf   :  { %798 = shalt.err (!%p795_p5)  }
  0xe0   :  { %s799_s26 = scalar_lea.vmem %s1201_s10, 16  ;;  %p804_p7 = scmp.lt.s32.totalorder %s1201_s10, %s1062_s21 }
  0xe1   :  { %p800_p6 = scmp.ne.s32.totalorder %s1201_s10, %s799_s26  ;;  %p805_p8 = scmp.lt.s32.totalorder %s1088_s12, %s799_s26 }
  0xe3   :  { %p806_p9 = por %p805_p8, %p804_p7 }
  0xe5   :  { %p807_p10 = pnand %p806_p9, %p800_p6 }
  0xe7   :  { %810 = shalt.err (!%p807_p10)  }
  0xe8   :  { %179 = dma.hbm_to_vmem [thread:$0]  %s166_s23, 16, %s1201_s10, [#allocation3 + $0x9] }
  0xe9   :  { %s1024_s28 = smov [#allocation2 + $0xa]   ;;  %s1229_s3 = sld [smem:[#allocation5 + $0xb]] }
  0xea   :  { %s193_s24 = sshll.u32 %s1024_s28, 4  ;;  %s1025_s4 = smov [#allocation2 + $0xb]   ;;  %s194_s24 = int_to_ptr.vmem [resolvable:$true] %s193_s24 }
  0xeb   :  { %s210_s5 = sshll.u32 %s1025_s4, 4  ;;  %s1231_s27 = sld [smem:[#allocation5 + $0xc]]  ;;  %s1234_s5 = int_to_ptr.vmem [resolvable:$true] %s210_s5 }
  0xec   :  { %s514_s6 = sshll.u32 %s1214_s17, 4 }
  0xed   :  { %s183_s11 = scalar_lea.hbm %s1336_s1, %s514_s6 }
  0xee   :  { %s811_s0 = scalar_lea.hbm %s183_s11, 16  ;;  %p814_p12 = scmp.lt.u32.totalorder %s183_s11, %s1336_s1 }
  0xef   :  { %p812_p11 = scmp.ne.s32.totalorder %s183_s11, %s811_s0  ;;  %p815_p13 = scmp.lt.u32.totalorder %s1079_s8, %s811_s0 }
  0xf0   :  { %p817_p1 = scmp.lt.u32.totalorder %s811_s0, %s183_s11 }
  0xf1   :  { %p816_p0 = por %p815_p13, %p814_p12 }
  0xf3   :  { %p818_p2 = por %p817_p1, %p816_p0 }
  0xf5   :  { %p819_p3 = pnand %p818_p2, %p812_p11 }
  0xf7   :  { %822 = shalt.err (!%p819_p3)  }
  0xf8   :  { %s823_s14 = scalar_lea.vmem %s194_s24, 16  ;;  %p828_p5 = scmp.lt.s32.totalorder %s194_s24, %s1062_s21 }
  0xf9   :  { %p824_p4 = scmp.ne.s32.totalorder %s194_s24, %s823_s14  ;;  %p829_p6 = scmp.lt.s32.totalorder %s1088_s12, %s823_s14 }
  0xfb   :  { %p830_p7 = por %p829_p6, %p828_p5 }
  0xfd   :  { %p831_p8 = pnand %p830_p7, %p824_p4 }
  0xff   :  { %834 = shalt.err (!%p831_p8)  }
 0x100   :  { %196 = dma.hbm_to_vmem [thread:$0]  %s183_s11, 16, %s194_s24, [#allocation3 + $0xa] }
 0x101   :  { %s516_s15 = sshll.u32 %s1229_s3, 4  ;;  %s1026_s16 = smov [#allocation2 + $0xc]  }
 0x102   :  { %s227_s19 = sshll.u32 %s1026_s16, 4  ;;  %s200_s18 = scalar_lea.hbm %s1336_s1, %s516_s15  ;;  %s1249_s19 = int_to_ptr.vmem [resolvable:$true] %s227_s19 }
 0x103   :  { %s835_s22 = scalar_lea.hbm %s200_s18, 16  ;;  %p838_p10 = scmp.lt.u32.totalorder %s200_s18, %s1336_s1 }
 0x104   :  { %p836_p9 = scmp.ne.s32.totalorder %s200_s18, %s835_s22  ;;  %p839_p11 = scmp.lt.u32.totalorder %s1079_s8, %s835_s22 }
 0x105   :  { %p841_p13 = scmp.lt.u32.totalorder %s835_s22, %s200_s18 }
 0x106   :  { %p840_p12 = por %p839_p11, %p838_p10 }
 0x108   :  { %p842_p0 = por %p841_p13, %p840_p12 }
 0x10a   :  { %p843_p1 = pnand %p842_p0, %p836_p9 }
 0x10c   :  { %846 = shalt.err (!%p843_p1)  }
 0x10d   :  { %s847_s29 = scalar_lea.vmem %s1234_s5, 16  ;;  %p852_p3 = scmp.lt.s32.totalorder %s1234_s5, %s1062_s21 }
 0x10e   :  { %p848_p2 = scmp.ne.s32.totalorder %s1234_s5, %s847_s29  ;;  %p853_p4 = scmp.lt.s32.totalorder %s1088_s12, %s847_s29 }
 0x110   :  { %p854_p5 = por %p853_p4, %p852_p3 }
 0x112   :  { %p855_p6 = pnand %p854_p5, %p848_p2 }
 0x114   :  { %858 = shalt.err (!%p855_p6)  }
 0x115   :  { %213 = dma.hbm_to_vmem [thread:$0]  %s200_s18, 16, %s1234_s5, [#allocation3 + $0xb] }
 0x116   :  { %s518_s30 = sshll.u32 %s1231_s27, 4  ;;  %s1262_s26 = sld [smem:[#allocation5 + $0xd]] }
 0x117   :  { %s217_s3 = scalar_lea.hbm %s1336_s1, %s518_s30 }
 0x118   :  { %s859_s4 = scalar_lea.hbm %s217_s3, 16  ;;  %p862_p8 = scmp.lt.u32.totalorder %s217_s3, %s1336_s1 }
 0x119   :  { %p860_p7 = scmp.ne.s32.totalorder %s217_s3, %s859_s4  ;;  %p863_p9 = scmp.lt.u32.totalorder %s1079_s8, %s859_s4 }
 0x11a   :  { %p865_p11 = scmp.lt.u32.totalorder %s859_s4, %s217_s3 }
 0x11b   :  { %p864_p10 = por %p863_p9, %p862_p8 }
 0x11d   :  { %p866_p12 = por %p865_p11, %p864_p10 }
 0x11f   :  { %p867_p13 = pnand %p866_p12, %p860_p7 }
 0x121   :  { %870 = shalt.err (!%p867_p13)  }
 0x122   :  { %s871_s5 = scalar_lea.vmem %s1249_s19, 16  ;;  %p876_p1 = scmp.lt.s32.totalorder %s1249_s19, %s1062_s21 }
 0x123   :  { %p872_p0 = scmp.ne.s32.totalorder %s1249_s19, %s871_s5  ;;  %p877_p2 = scmp.lt.s32.totalorder %s1088_s12, %s871_s5 }
 0x125   :  { %p878_p3 = por %p877_p2, %p876_p1 }
 0x127   :  { %p879_p4 = pnand %p878_p3, %p872_p0 }
 0x129   :  { %882 = shalt.err (!%p879_p4)  }
 0x12a   :  { %230 = dma.hbm_to_vmem [thread:$0]  %s217_s3, 16, %s1249_s19, [#allocation3 + $0xc] }
 0x12b   :  { %s1027_s27 = smov [#allocation2 + $0xd]   ;;  %s1277_s11 = sld [smem:[#allocation5 + $0xe]] }
 0x12c   :  { %s244_s9 = sshll.u32 %s1027_s27, 4  ;;  %s1028_s0 = smov [#allocation2 + $0xe]   ;;  %s245_s9 = int_to_ptr.vmem [resolvable:$true] %s244_s9 }
 0x12d   :  { %s261_s13 = sshll.u32 %s1028_s0, 4  ;;  %s1279_s10 = sld [smem:[#allocation5 + $0xf]]  ;;  %s1282_s13 = int_to_ptr.vmem [resolvable:$true] %s261_s13 }
 0x12e   :  { %s520_s14 = sshll.u32 %s1262_s26, 4 }
 0x12f   :  { %s234_s20 = scalar_lea.hbm %s1336_s1, %s520_s14 }
 0x130   :  { %s883_s17 = scalar_lea.hbm %s234_s20, 16  ;;  %p886_p6 = scmp.lt.u32.totalorder %s234_s20, %s1336_s1 }
 0x131   :  { %p884_p5 = scmp.ne.s32.totalorder %s234_s20, %s883_s17  ;;  %p887_p7 = scmp.lt.u32.totalorder %s1079_s8, %s883_s17 }
 0x132   :  { %p889_p9 = scmp.lt.u32.totalorder %s883_s17, %s234_s20 }
 0x133   :  { %p888_p8 = por %p887_p7, %p886_p6 }
 0x135   :  { %p890_p10 = por %p889_p9, %p888_p8 }
 0x137   :  { %p891_p11 = pnand %p890_p10, %p884_p5 }
 0x139   :  { %894 = shalt.err (!%p891_p11)  }
 0x13a   :  { %s895_s22 = scalar_lea.vmem %s245_s9, 16  ;;  %p900_p13 = scmp.lt.s32.totalorder %s245_s9, %s1062_s21 }
 0x13b   :  { %p896_p12 = scmp.ne.s32.totalorder %s245_s9, %s895_s22  ;;  %p901_p0 = scmp.lt.s32.totalorder %s1088_s12, %s895_s22 }
 0x13d   :  { %p902_p1 = por %p901_p0, %p900_p13 }
 0x13f   :  { %p903_p2 = pnand %p902_p1, %p896_p12 }
 0x141   :  { %906 = shalt.err (!%p903_p2)  }
 0x142   :  { %247 = dma.hbm_to_vmem [thread:$0]  %s234_s20, 16, %s245_s9, [#allocation3 + $0xd] }
 0x143   :  { %s522_s23 = sshll.u32 %s1277_s11, 4  ;;  %s1029_s25 = smov [#allocation2 + $0xf]  }
 0x144   :  { %s278_s29 = sshll.u32 %s1029_s25, 4  ;;  %s251_s28 = scalar_lea.hbm %s1336_s1, %s522_s23  ;;  %s1297_s29 = int_to_ptr.vmem [resolvable:$true] %s278_s29 }
 0x145   :  { %s907_s24 = scalar_lea.hbm %s251_s28, 16  ;;  %p910_p4 = scmp.lt.u32.totalorder %s251_s28, %s1336_s1 }
 0x146   :  { %p908_p3 = scmp.ne.s32.totalorder %s251_s28, %s907_s24  ;;  %p911_p5 = scmp.lt.u32.totalorder %s1079_s8, %s907_s24 }
 0x147   :  { %p913_p7 = scmp.lt.u32.totalorder %s907_s24, %s251_s28 }
 0x148   :  { %p912_p6 = por %p911_p5, %p910_p4 }
 0x14a   :  { %p914_p8 = por %p913_p7, %p912_p6 }
 0x14c   :  { %p915_p9 = pnand %p914_p8, %p908_p3 }
 0x14e   :  { %918 = shalt.err (!%p915_p9)  }
 0x14f   :  { %s919_s6 = scalar_lea.vmem %s1282_s13, 16  ;;  %p924_p11 = scmp.lt.s32.totalorder %s1282_s13, %s1062_s21 }
 0x150   :  { %p920_p10 = scmp.ne.s32.totalorder %s1282_s13, %s919_s6  ;;  %p925_p12 = scmp.lt.s32.totalorder %s1088_s12, %s919_s6 }
 0x152   :  { %p926_p13 = por %p925_p12, %p924_p11 }
 0x154   :  { %p927_p0 = pnand %p926_p13, %p920_p10 }
 0x156   :  { %930 = shalt.err (!%p927_p0)  }
 0x157   :  { %264 = dma.hbm_to_vmem [thread:$0]  %s251_s28, 16, %s1282_s13, [#allocation3 + $0xe] }
 0x158   :  { %s524_s7 = sshll.u32 %s1279_s10, 4 }
 0x159   :  { %s268_s9 = scalar_lea.hbm %s1336_s1, %s524_s7 }
 0x15a   :  { %s931_s11 = scalar_lea.hbm %s268_s9, 16  ;;  %p934_p2 = scmp.lt.u32.totalorder %s268_s9, %s1336_s1 }
 0x15b   :  { %p932_p1 = scmp.ne.s32.totalorder %s268_s9, %s931_s11  ;;  %p935_p3 = scmp.lt.u32.totalorder %s1079_s8, %s931_s11 }
 0x15c   :  { %p937_p5 = scmp.lt.u32.totalorder %s931_s11, %s268_s9 }
 0x15d   :  { %p936_p4 = por %p935_p3, %p934_p2 }
 0x15f   :  { %p938_p6 = por %p937_p5, %p936_p4 }
 0x161   :  { %p939_p7 = pnand %p938_p6, %p932_p1 }
 0x163   :  { %942 = shalt.err (!%p939_p7)  }
 0x164   :  { %s943_s13 = scalar_lea.vmem %s1297_s29, 16  ;;  %p948_p9 = scmp.lt.s32.totalorder %s1297_s29, %s1062_s21 }
 0x165   :  { %p944_p8 = scmp.ne.s32.totalorder %s1297_s29, %s943_s13  ;;  %p949_p10 = scmp.lt.s32.totalorder %s1088_s12, %s943_s13 }
 0x167   :  { %p950_p11 = por %p949_p10, %p948_p9 }
 0x169   :  { %p951_p12 = pnand %p950_p11, %p944_p8 }
 0x16b   :  { %954 = shalt.err (!%p951_p12)  }
 0x16c   :  { %281 = dma.hbm_to_vmem [thread:$0]  %s268_s9, 16, %s1297_s29, [#allocation3 + $0xf] }
 0x16d   :  { %979 = dma.done.wait [#allocation3], 16 }
 0x16e   :  { %980 = vsyncadd [#allocation3], 4294967280 }
 0x16f   :  { %981 = dma.done.wait [#allocation3 + $0x1], 16 }
 0x170   :  { %982 = vsyncadd [#allocation3 + $0x1], 4294967280 }
 0x171   :  { %983 = dma.done.wait [#allocation3 + $0x2], 16 }
 0x172   :  { %984 = vsyncadd [#allocation3 + $0x2], 4294967280 }
 0x173   :  { %985 = dma.done.wait [#allocation3 + $0x3], 16 }
 0x174   :  { %986 = vsyncadd [#allocation3 + $0x3], 4294967280 }
 0x175   :  { %987 = dma.done.wait [#allocation3 + $0x4], 16 }
 0x176   :  { %988 = vsyncadd [#allocation3 + $0x4], 4294967280 }
 0x177   :  { %989 = dma.done.wait [#allocation3 + $0x5], 16 }
 0x178   :  { %990 = vsyncadd [#allocation3 + $0x5], 4294967280 }
 0x179   :  { %991 = dma.done.wait [#allocation3 + $0x6], 16 }
 0x17a   :  { %992 = vsyncadd [#allocation3 + $0x6], 4294967280 }
 0x17b   :  { %993 = dma.done.wait [#allocation3 + $0x7], 16 }
 0x17c   :  { %994 = vsyncadd [#allocation3 + $0x7], 4294967280 }
 0x17d   :  { %995 = dma.done.wait [#allocation3 + $0x8], 16 }
 0x17e   :  { %996 = vsyncadd [#allocation3 + $0x8], 4294967280 }
 0x17f   :  { %997 = dma.done.wait [#allocation3 + $0x9], 16 }
 0x180   :  { %998 = vsyncadd [#allocation3 + $0x9], 4294967280 }
 0x181   :  { %999 = dma.done.wait [#allocation3 + $0xa], 16 }
 0x182   :  { %1000 = vsyncadd [#allocation3 + $0xa], 4294967280 }
 0x183   :  { %1001 = dma.done.wait [#allocation3 + $0xb], 16 }
 0x184   :  { %1002 = vsyncadd [#allocation3 + $0xb], 4294967280 }
 0x185   :  { %1003 = dma.done.wait [#allocation3 + $0xc], 16 }
 0x186   :  { %1004 = vsyncadd [#allocation3 + $0xc], 4294967280 }
 0x187   :  { %1005 = dma.done.wait [#allocation3 + $0xd], 16 }
 0x188   :  { %1006 = vsyncadd [#allocation3 + $0xd], 4294967280 }
 0x189   :  { %1007 = dma.done.wait [#allocation3 + $0xe], 16 }
 0x18a   :  { %1008 = vsyncadd [#allocation3 + $0xe], 4294967280 }
 0x18b   :  { %1009 = dma.done.wait [#allocation3 + $0xf], 16 }
 0x18c   :  { %1010 = vsyncadd [#allocation3 + $0xf], 4294967280  ;;  %s1030_s1 = smov [#allocation6]   ;;  %v331_v0 = vld [vmem:[#allocation2] sm:$0xff]  ;;  %v332_v1 = vld [vmem:[#allocation2 + $0x8] sm:$0xff] }
 0x18d   :  { %s340_s21 = sshll.u32 %s1030_s1, 4  ;;  %333 = vst [vmem:[#allocation6] sm:$0xff] %v331_v0  ;;  %334 = vst [vmem:[#allocation6 + $0x8] sm:$0xff] %v332_v1  ;;  %s341_s21 = int_to_ptr.vmem [resolvable:$true] %s340_s21 }
 0x18e   :  { %s955_s8 = scalar_lea.vmem %s341_s21, 256  ;;  %p960_p0 = scmp.lt.s32.totalorder %s341_s21, %s341_s21 }
 0x18f   :  { %p956_p13 = scmp.ne.s32.totalorder %s341_s21, %s955_s8  ;;  %p961_p1 = scmp.lt.s32.totalorder %s955_s8, %s955_s8 }
 0x191   :  { %p962_p2 = por %p961_p1, %p960_p0 }
 0x193   :  { %p963_p3 = pnand %p962_p2, %p956_p13 }
 0x195   :  { %966 = shalt.err (!%p963_p3)
}
 0x196   :  { %s967_s15 = scalar_lea.hbm %s1337_s2, 256 }
 0x197   :  { %p968_p4 = scmp.ne.s32.totalorder %s1337_s2, %s967_s15  ;;  %p971_p5 = scmp.lt.u32.totalorder %s967_s15, %s1337_s2 }
 0x199   :  { %p973_p6 = pnand %p971_p5, %p968_p4 }
 0x19b   :  { %976 = shalt.err (!%p973_p6)
}
 0x19c   :  { %s1031_s19 = smov 128   ;;  %s1032_s22 = smov 8  }
 0x19d   :  { %346 = dma.vmem_to_hbm [thread:$0]  %s341_s21, 256, %s1337_s2, [#allocation7], %s1031_s19, %s1031_s19, %s1032_s22  }
 0x19e   :  { %1011 = dma.done.wait [#allocation7], 256  }
 0x19f   :  { %1012 = vsyncadd [#allocation7], 4294967040 }
 0x1a0   :  { %350 = vsyncpa [#allocation7], 1 }
 0x1a1   :  { %351 = vsyncmov [#allocation3] }
 0x1a4   :  { %s352_s29 = vpop.sfrf %351 }
 0x1a5   :  { %p525_p7 = scmp.ne.s32.totalorder %s352_s29, 0 }
 0x1a7   :  { %356 = shalt.err (%p525_p7)  }
 0x1a8   :  { %358 = vsyncmov [#allocation3 + $0x1] }
 0x1ab   :  { %s359_s30 = vpop.sfrf %358 }
 0x1ac   :  { %p526_p8 = scmp.ne.s32.totalorder %s359_s30, 0 }
 0x1ae   :  { %363 = shalt.err (%p526_p8)  }
 0x1af   :  { %365 = vsyncmov [#allocation3 + $0x2] }
 0x1b2   :  { %s366_s26 = vpop.sfrf %365 }
 0x1b3   :  { %p527_p9 = scmp.ne.s32.totalorder %s366_s26, 0 }
 0x1b5   :  { %370 = shalt.err (%p527_p9)  }
 0x1b6   :  { %372 = vsyncmov [#allocation3 + $0x3] }
 0x1b9   :  { %s373_s28 = vpop.sfrf %372 }
 0x1ba   :  { %p528_p10 = scmp.ne.s32.totalorder %s373_s28, 0 }
 0x1bc   :  { %377 = shalt.err (%p528_p10)  }
 0x1bd   :  { %379 = vsyncmov [#allocation3 + $0x4] }
 0x1c0   :  { %s380_s2 = vpop.sfrf %379 }
 0x1c1   :  { %p529_p11 = scmp.ne.s32.totalorder %s380_s2, 0 }
 0x1c3   :  { %384 = shalt.err (%p529_p11)  }
 0x1c4   :  { %386 = vsyncmov [#allocation3 + $0x5] }
 0x1c7   :  { %s387_s24 = vpop.sfrf %386 }
 0x1c8   :  { %p530_p12 = scmp.ne.s32.totalorder %s387_s24, 0 }
 0x1ca   :  { %391 = shalt.err (%p530_p12)  }
 0x1cb   :  { %393 = vsyncmov [#allocation3 + $0x6] }
 0x1ce   :  { %s394_s3 = vpop.sfrf %393 }
 0x1cf   :  { %p531_p13 = scmp.ne.s32.totalorder %s394_s3, 0 }
 0x1d1   :  { %398 = shalt.err (%p531_p13)  }
 0x1d2   :  { %400 = vsyncmov [#allocation3 + $0x7] }
 0x1d5   :  { %s401_s4 = vpop.sfrf %400 }
 0x1d6   :  { %p532_p0 = scmp.ne.s32.totalorder %s401_s4, 0 }
 0x1d8   :  { %405 = shalt.err (%p532_p0)  }
 0x1d9   :  { %407 = vsyncmov [#allocation3 + $0x8] }
 0x1dc   :  { %s408_s6 = vpop.sfrf %407 }
 0x1dd   :  { %p533_p1 = scmp.ne.s32.totalorder %s408_s6, 0 }
 0x1df   :  { %412 = shalt.err (%p533_p1)  }
 0x1e0   :  { %414 = vsyncmov [#allocation3 + $0x9] }
 0x1e3   :  { %s415_s7 = vpop.sfrf %414 }
 0x1e4   :  { %p534_p2 = scmp.ne.s32.totalorder %s415_s7, 0 }
 0x1e6   :  { %419 = shalt.err (%p534_p2)  }
 0x1e7   :  { %421 = vsyncmov [#allocation3 + $0xa] }
 0x1ea   :  { %s422_s5 = vpop.sfrf %421 }
 0x1eb   :  { %p535_p3 = scmp.ne.s32.totalorder %s422_s5, 0 }
 0x1ed   :  { %426 = shalt.err (%p535_p3)  }
 0x1ee   :  { %428 = vsyncmov [#allocation3 + $0xb] }
 0x1f1   :  { %s429_s27 = vpop.sfrf %428 }
 0x1f2   :  { %p536_p4 = scmp.ne.s32.totalorder %s429_s27, 0 }
 0x1f4   :  { %433 = shalt.err (%p536_p4)  }
 0x1f5   :  { %435 = vsyncmov [#allocation3 + $0xc] }
 0x1f8   :  { %s436_s9 = vpop.sfrf %435 }
 0x1f9   :  { %p537_p5 = scmp.ne.s32.totalorder %s436_s9, 0 }
 0x1fb   :  { %440 = shalt.err (%p537_p5)  }
 0x1fc   :  { %442 = vsyncmov [#allocation3 + $0xd] }
 0x1ff   :  { %s443_s11 = vpop.sfrf %442 }
 0x200   :  { %p538_p6 = scmp.ne.s32.totalorder %s443_s11, 0 }
 0x202   :  { %447 = shalt.err (%p538_p6)  }
 0x203   :  { %449 = vsyncmov [#allocation3 + $0xe] }
 0x206   :  { %s450_s0 = vpop.sfrf %449 }
 0x207   :  { %p539_p7 = scmp.ne.s32.totalorder %s450_s0, 0 }
 0x209   :  { %454 = shalt.err (%p539_p7)  }
 0x20a   :  { %456 = vsyncmov [#allocation3 + $0xf] }
 0x20d   :  { %s457_s14 = vpop.sfrf %456 }
 0x20e   :  { %p540_p8 = scmp.ne.s32.totalorder %s457_s14, 0 }
 0x210   :  { %461 = shalt.err (%p540_p8)  }

</bundles_post_ra>
